<compile_context>
chip_gen: v7x
topology: tpu7x:2x2x1
jax: 0.10.0
libtpu: 0.0.40
codegen_flags: <defaults>
</compile_context>

<pallas_src>
from functools import partial

import numpy as np
import jax
import jax.numpy as jnp
from jax import lax
from jax.experimental import pallas as pl
from jax.experimental.pallas import tpu as pltpu

EPS = 1e-5


# ---------------------------------------------------------------------------
# Fused kernel.
# grid = (n_hw,)  (sequential / "arbitrary": accumulator + BN span the grid).
#
# Per step t:
#   for each batch row b (static unroll, B is small):
#     y = relu( Wc^T(F,C) @ x[b, :, hw-tile](C,T) + bc )        # bf16 MXU, f32 acc
#     feat_sc[:, b] += sum_lanes(y)                             # (F, 1) add
# Last step:
#   feat = (feat_sc - n_pad*relu(bc))^T / HW                    # (B, F) spatial mean
#   h1   = feat @ W1^T + b1 ; s = SiLU(h1)                      # (B, 2L)
#   y1   = BatchNorm(s)      (batch stats over sublanes, biased var, eps=1e-5)
#   h2   = y1 @ W2^T + b2                                       # (B, L)
#   out  = BatchNorm(h2)                                        # (B, L) stored directly
# ---------------------------------------------------------------------------
def encoder_kernel(x_ref, wct_ref, bc_ref,
                   w1t_ref, b1_ref, g1_ref, be1_ref,
                   w2t_ref, b2_ref, g2_ref, be2_ref,
                   out_ref, feat_sc, *, hw_total, n_pad):
    t = pl.program_id(0)
    nt = pl.num_programs(0)
    B = x_ref.shape[0]

    @pl.when(t == 0)
    def _init():
        feat_sc[...] = jnp.zeros_like(feat_sc)

    # ---- frozen backbone on this whole-batch hw slab ----
    wct = wct_ref[...]                                       # (F, C) bf16 (frozen)
    bc = bc_ref[...]                                         # (F, 1) f32
    for b in range(B):                                       # B is small & static
        xb = x_ref[b].astype(jnp.bfloat16)                   # in-kernel f32->bf16 cast
        y = jnp.dot(wct, xb, preferred_element_type=jnp.float32)   # (F, T) on MXU
        y = jnp.maximum(y + bc, 0.0)                         # ReLU
        # accumulate this batch row's spatial partial sum into column b
        feat_sc[:, pl.ds(b, 1)] += jnp.sum(y, axis=1, keepdims=True)

    # ---- fused Encoder head, once, after the last spatial tile ----
    @pl.when(t == nt - 1)
    def _head():
        feat_fb = feat_sc[...]                               # (F, B)
        if n_pad:
            # zero-padded spatial columns each contributed exactly relu(bc)
            feat_fb = feat_fb - float(n_pad) * jnp.maximum(bc_ref[...], 0.0)
        feat = feat_fb.T * (1.0 / hw_total)                  # (B, F) spatial mean

        h1 = jnp.dot(feat, w1t_ref[...],
                     preferred_element_type=jnp.float32) + b1_ref[...]   # (B, 2L)
        s = h1 * (1.0 / (1.0 + jnp.exp(-h1)))                # SiLU

        m1 = jnp.mean(s, axis=0, keepdims=True)              # batch stats (sublanes)
        v1 = jnp.mean((s - m1) ** 2, axis=0, keepdims=True)
        y1 = g1_ref[...] * (s - m1) * lax.rsqrt(v1 + EPS) + be1_ref[...]

        h2 = jnp.dot(y1, w2t_ref[...],
                     preferred_element_type=jnp.float32) + b2_ref[...]   # (B, L)

        m2 = jnp.mean(h2, axis=0, keepdims=True)
        v2 = jnp.mean((h2 - m2) ** 2, axis=0, keepdims=True)
        out_ref[...] = (g2_ref[...] * (h2 - m2) * lax.rsqrt(v2 + EPS)
                        + be2_ref[...])                       # (B, L), lane-dense


# ---------------------------------------------------------------------------
# Tiling / VMEM budgeting helpers (generation-aware).
# ---------------------------------------------------------------------------
def _vmem_capacity_bytes():
    try:
        return int(pltpu.get_tpu_info().vmem_capacity_bytes)
    except Exception:
        return 64 * 1024 * 1024          # conservative (v7x-sized) fallback


def _round_up(v, m):
    return ((v + m - 1) // m) * m


def _select_hw_tile(B, C, HW_pad, slab_budget_bytes):
    """Largest 128-multiple divisor of HW_pad whose (B, C, tile) f32 slab fits
    the byte budget (always >= 128; HW_pad is a multiple of 128)."""
    per_col_bytes = B * C * 4                          # x stays f32 in HBM/VMEM
    cap = max(128, (slab_budget_bytes // per_col_bytes) // 128 * 128)
    if HW_pad <= cap:
        return HW_pad
    t = cap
    while t >= 128:
        if HW_pad % t == 0:
            return t
        t -= 128
    return 128


# ---------------------------------------------------------------------------
# Wrapper
# ---------------------------------------------------------------------------
def encoder_forward(x_nchw, params):
    B, C, H, W = x_nchw.shape
    HW = H * W
    F = params["wct"].shape[0]            # last_layer_size
    L2 = params["w1t"].shape[1]           # latent_size * 2
    L = params["w2t"].shape[1]            # latent_size

    # native NCHW -> (B, C, HW) is a free reshape; keep f32 (bf16 cast in-kernel).
    x_flat = x_nchw.reshape(B, C, HW)
    HW_pad = _round_up(HW, 128)
    n_pad = HW_pad - HW
    if n_pad:
        x_flat = jnp.pad(x_flat, ((0, 0), (0, 0), (0, n_pad)))

    # generation-aware budgets: v7x has 64 MiB VMEM, v5e/v6e have 128 MiB.
    vmem_budget = min(int(_vmem_capacity_bytes() * 0.75), 100 * 1024 * 1024)
    slab_budget = min(4 * 1024 * 1024, vmem_budget // 8)     # ~85%+ of HBM roofline
    hw_tile = _select_hw_tile(B, C, HW_pad, slab_budget)
    n_hw = HW_pad // hw_tile

    x_slab_bytes = B * C * hw_tile * 4
    param_bytes = (F * C * 2 + F * 4 + F * L2 * 4 + L2 * L * 4
                   + 3 * L2 * 4 + 4 * L * 4)
    need = 2 * x_slab_bytes + 2 * param_bytes + F * B * 4 + 2 * B * L * 4
    vmem_limit = int(min(vmem_budget, max(2 * need, 32 * 1024 * 1024)))

    kernel = partial(encoder_kernel, hw_total=float(HW), n_pad=n_pad)

    def build(single_buffer_params):
        def pspec(shape):
            # constant block index -> a single VMEM buffer is enough.
            if single_buffer_params:
                return pl.BlockSpec(shape, lambda t: (0,) * len(shape),
                                    pipeline_mode=pl.Buffered(1))
            return pl.BlockSpec(shape, lambda t: (0,) * len(shape))

        return pl.pallas_call(
            kernel,
            out_shape=jax.ShapeDtypeStruct((B, L), jnp.float32),
            grid=(n_hw,),
            in_specs=[
                pl.BlockSpec((B, C, hw_tile), lambda t: (0, 0, t)),  # x (f32)
                pspec((F, C)),       # Wc^T  (bf16, frozen backbone)
                pspec((F, 1)),       # bc
                pspec((F, L2)),      # W1^T
                pspec((1, L2)),      # b1
                pspec((1, L2)),      # gamma1
                pspec((1, L2)),      # beta1
                pspec((L2, L)),      # W2^T
                pspec((1, L)),       # b2
                pspec((1, L)),       # gamma2
                pspec((1, L)),       # beta2
            ],
            out_specs=pl.BlockSpec((B, L), lambda t: (0, 0)),
            scratch_shapes=[pltpu.VMEM((F, B), jnp.float32)],        # feat accumulator
            compiler_params=pltpu.CompilerParams(
                # feat_sc / BatchNorm span the whole grid: keep the axis sequential.
                dimension_semantics=("arbitrary",),
                vmem_limit_bytes=vmem_limit),
        )

    args = (x_flat, params["wct"], params["bc"],
            params["w1t"], params["b1"], params["g1"], params["be1"],
            params["w2t"], params["b2"], params["g2"], params["be2"])
    try:
        return build(single_buffer_params=True)(*args)
    except Exception:
        # pl.Buffered(1) unsupported on this jax/libtpu combo: fall back to the
        # default double-buffered weights (identical numerics, a bit more VMEM).
        return build(single_buffer_params=False)(*args)


# ---------------------------------------------------------------------------
# Pure-JAX reference (mirrors the PyTorch forward in training mode, including
# the bf16 rounding of the frozen backbone operands used by the kernel).
# ---------------------------------------------------------------------------
def encoder_reference(x_nchw, params):
    B, C, H, W = x_nchw.shape
    HW = H * W
    x_q = x_nchw.reshape(B, C, HW).astype(jnp.bfloat16).astype(jnp.float32)
    wc = params["wct"].astype(jnp.float32)                   # (F, C)

    y = jnp.einsum("fc,bcs->bfs", wc, x_q, precision="highest")
    y = jnp.maximum(y + params["bc"][None, :, :], 0.0)       # (B, F, S)
    feat = jnp.mean(y, axis=-1)                              # (B, F)

    h1 = jnp.dot(feat, params["w1t"], precision="highest") + params["b1"]
    s = h1 * (1.0 / (1.0 + jnp.exp(-h1)))
    m1 = jnp.mean(s, axis=0, keepdims=True)
    v1 = jnp.mean((s - m1) ** 2, axis=0, keepdims=True)
    y1 = params["g1"] * (s - m1) / jnp.sqrt(v1 + EPS) + params["be1"]

    h2 = jnp.dot(y1, params["w2t"], precision="highest") + params["b2"]
    m2 = jnp.mean(h2, axis=0, keepdims=True)
    v2 = jnp.mean((h2 - m2) ** 2, axis=0, keepdims=True)
    return params["g2"] * (h2 - m2) / jnp.sqrt(v2 + EPS) + params["be2"]


def make_params(key, C, last_layer_size, latent_size):
    F, L2, L = last_layer_size, latent_size * 2, latent_size
    ks = jax.random.split(key, 6)
    # frozen backbone (1x1-conv) weights, stored bf16 for the MXU fast path
    wct = (jax.random.normal(ks[0], (F, C), jnp.float32)
           / np.sqrt(C)).astype(jnp.bfloat16)                # (F, C)
    bc = jax.random.normal(ks[1], (F, 1), jnp.float32) * 0.1
    # latent1: Linear(F, 2L), stored transposed (in, out) for the batch-major head
    w1t = jax.random.normal(ks[2], (F, L2), jnp.float32) / np.sqrt(F)
    b1 = jax.random.normal(ks[3], (1, L2), jnp.float32) * 0.1
    # latent2: Linear(2L, L), stored transposed
    w2t = jax.random.normal(ks[4], (L2, L), jnp.float32) / np.sqrt(L2)
    b2 = jax.random.normal(ks[5], (1, L), jnp.float32) * 0.1
    return {
        "wct": wct, "bc": bc,
        "w1t": w1t, "b1": b1,
        "g1": jnp.ones((1, L2), jnp.float32),    # BatchNorm1d default init
        "be1": jnp.zeros((1, L2), jnp.float32),
        "w2t": w2t, "b2": b2,
        "g2": jnp.ones((1, L), jnp.float32),
        "be2": jnp.zeros((1, L), jnp.float32),
    }


if __name__ == "__main__":
    B, C, H, W = 2, 4, 16, 16
    last_layer_size = 32
    latent_size = 16

    key = jax.random.PRNGKey(0)
    kx, kp = jax.random.split(key)
    x = jax.random.normal(kx, (B, C, H, W), jnp.float32)
    params = make_params(kp, C, last_layer_size, latent_size)

    out = encoder_forward(x, params)
    out = jax.block_until_ready(out)

    ref = encoder_reference(x, params)
    np.testing.assert_allclose(np.asarray(out), np.asarray(ref),
                               rtol=2e-3, atol=2e-3)
    assert out.shape == (B, latent_size)
    print("KERNEL_OK")
</pallas_src>

<mosaic_0001>
module attributes {stable_mosaic.version = 11 : i64} {
  func.func @encoder_kernel(%arg0: i32, %arg1: memref<2x4x256xf32, #tpu.memory_space<vmem>>, %arg2: memref<32x4xbf16, #tpu.memory_space<vmem>>, %arg3: memref<32x1xf32, #tpu.memory_space<vmem>>, %arg4: memref<32x32xf32, #tpu.memory_space<vmem>>, %arg5: memref<1x32xf32, #tpu.memory_space<vmem>>, %arg6: memref<1x32xf32, #tpu.memory_space<vmem>>, %arg7: memref<1x32xf32, #tpu.memory_space<vmem>>, %arg8: memref<32x16xf32, #tpu.memory_space<vmem>>, %arg9: memref<1x16xf32, #tpu.memory_space<vmem>>, %arg10: memref<1x16xf32, #tpu.memory_space<vmem>>, %arg11: memref<1x16xf32, #tpu.memory_space<vmem>>, %arg12: memref<2x16xf32, #tpu.memory_space<vmem>>, %arg13: memref<32x2xf32, #tpu.memory_space<vmem>>) attributes {dimension_semantics = [#tpu.dimension_semantics<arbitrary>], iteration_bounds = array<i64: 1>, scalar_prefetch = 0 : i64, scratch_operands = 1 : i64, tpu.core_type = #tpu.core_type<tc>, window_params = [{transform_indices = @transform_0, window_bounds = array<i64: 2, 4, 256>}, {pipeline_mode = #tpu.pipeline_mode<synchronous>, transform_indices = @transform_1, window_bounds = array<i64: 32, 4>}, {pipeline_mode = #tpu.pipeline_mode<synchronous>, transform_indices = @transform_2, window_bounds = array<i64: 32, 1>}, {pipeline_mode = #tpu.pipeline_mode<synchronous>, transform_indices = @transform_3, window_bounds = array<i64: 32, 32>}, {pipeline_mode = #tpu.pipeline_mode<synchronous>, transform_indices = @transform_4, window_bounds = array<i64: 1, 32>}, {pipeline_mode = #tpu.pipeline_mode<synchronous>, transform_indices = @transform_5, window_bounds = array<i64: 1, 32>}, {pipeline_mode = #tpu.pipeline_mode<synchronous>, transform_indices = @transform_6, window_bounds = array<i64: 1, 32>}, {pipeline_mode = #tpu.pipeline_mode<synchronous>, transform_indices = @transform_7, window_bounds = array<i64: 32, 16>}, {pipeline_mode = #tpu.pipeline_mode<synchronous>, transform_indices = @transform_8, window_bounds = array<i64: 1, 16>}, {pipeline_mode = #tpu.pipeline_mode<synchronous>, transform_indices = @transform_9, window_bounds = array<i64: 1, 16>}, {pipeline_mode = #tpu.pipeline_mode<synchronous>, transform_indices = @transform_10, window_bounds = array<i64: 1, 16>}, {pipeline_mode = #tpu.pipeline_mode<synchronous>, transform_indices = @transform_11, window_bounds = array<i64: 2, 16>}]} {
    %c0_i32 = arith.constant 0 : i32
    %0 = arith.cmpi eq, %arg0, %c0_i32 : i32
    %1 = arith.extui %0 : i1 to i32
    %c0_i32_0 = arith.constant 0 : i32
    %2 = arith.cmpi ne, %1, %c0_i32_0 : i32
    scf.if %2 {
      %cst_24 = arith.constant 0.000000e+00 : f32
      %34 = vector.broadcast %cst_24 : f32 to vector<32x2xf32>
      %c0_25 = arith.constant 0 : index
      %c0_26 = arith.constant 0 : index
      %35 = vector.load %arg13[%c0_25, %c0_26] : memref<32x2xf32, #tpu.memory_space<vmem>>, vector<32x2xf32>
      tpu.vector_store %arg13[%c0_25, %c0_26], %34 {strides = array<i32>} : memref<32x2xf32, #tpu.memory_space<vmem>>, vector<32x2xf32>,
    } else {
    }
    %c0 = arith.constant 0 : index
    %c0_1 = arith.constant 0 : index
    %3 = vector.load %arg2[%c0, %c0_1] : memref<32x4xbf16, #tpu.memory_space<vmem>>, vector<32x4xbf16>
    %c0_2 = arith.constant 0 : index
    %c0_3 = arith.constant 0 : index
    %4 = vector.load %arg3[%c0_2, %c0_3] : memref<32x1xf32, #tpu.memory_space<vmem>>, vector<32x1xf32>
    %c0_4 = arith.constant 0 : index
    %c0_5 = arith.constant 0 : index
    %c0_6 = arith.constant 0 : index
    %5 = vector.load %arg1[%c0_4, %c0_5, %c0_6] : memref<2x4x256xf32, #tpu.memory_space<vmem>>, vector<1x4x256xf32>
    %6 = vector.shape_cast %5 : vector<1x4x256xf32> to vector<4x256xf32>
    %7 = arith.truncf %6 : vector<4x256xf32> to vector<4x256xbf16>
    %cst = arith.constant dense<0.000000e+00> : vector<32x256xf32>
    %8 = tpu.matmul %3, %7, %cst {dimension_numbers = #tpu.dot_dimension_numbers<[1], [0], [0], [1], [0, 0, 1, 1], [], []>} : vector<32x4xbf16>, vector<4x256xbf16>, vector<32x256xf32> -> vector<32x256xf32>
    %9 = vector.broadcast %4 : vector<32x1xf32> to vector<32x256xf32>
    %10 = arith.addf %8, %9 : vector<32x256xf32>
    %cst_7 = arith.constant 0.000000e+00 : f32
    %11 = vector.broadcast %cst_7 : f32 to vector<32x256xf32>
    %12 = arith.maximumf %10, %11 : vector<32x256xf32>
    %c0_8 = arith.constant 0 : index
    %c0_9 = arith.constant 0 : index
    %13 = vector.load %arg13[%c0_8, %c0_9] : memref<32x2xf32, #tpu.memory_space<vmem>>, vector<32x1xf32>
    %cst_10 = arith.constant dense<0.000000e+00> : vector<32xf32>
    %14 = vector.multi_reduction <add>, %12, %cst_10 [1] : vector<32x256xf32> to vector<32xf32>
    %15 = vector.shape_cast %14 : vector<32xf32> to vector<32x1xf32>
    %16 = arith.addf %13, %15 : vector<32x1xf32>
    %c0_11 = arith.constant 0 : index
    %c0_12 = arith.constant 0 : index
    %17 = vector.load %arg13[%c0_11, %c0_12] : memref<32x2xf32, #tpu.memory_space<vmem>>, vector<32x1xf32>
    tpu.vector_store %arg13[%c0_11, %c0_12], %16 {strides = array<i32>} : memref<32x2xf32, #tpu.memory_space<vmem>>, vector<32x1xf32>,
    %c1 = arith.constant 1 : index
    %c0_13 = arith.constant 0 : index
    %c0_14 = arith.constant 0 : index
    %18 = vector.load %arg1[%c1, %c0_13, %c0_14] : memref<2x4x256xf32, #tpu.memory_space<vmem>>, vector<1x4x256xf32>
    %19 = vector.shape_cast %18 : vector<1x4x256xf32> to vector<4x256xf32>
    %20 = arith.truncf %19 : vector<4x256xf32> to vector<4x256xbf16>
    %cst_15 = arith.constant dense<0.000000e+00> : vector<32x256xf32>
    %21 = tpu.matmul %3, %20, %cst_15 {dimension_numbers = #tpu.dot_dimension_numbers<[1], [0], [0], [1], [0, 0, 1, 1], [], []>} : vector<32x4xbf16>, vector<4x256xbf16>, vector<32x256xf32> -> vector<32x256xf32>
    %22 = vector.broadcast %4 : vector<32x1xf32> to vector<32x256xf32>
    %23 = arith.addf %21, %22 : vector<32x256xf32>
    %cst_16 = arith.constant 0.000000e+00 : f32
    %24 = vector.broadcast %cst_16 : f32 to vector<32x256xf32>
    %25 = arith.maximumf %23, %24 : vector<32x256xf32>
    %c0_17 = arith.constant 0 : index
    %c1_18 = arith.constant 1 : index
    %26 = vector.load %arg13[%c0_17, %c1_18] : memref<32x2xf32, #tpu.memory_space<vmem>>, vector<32x1xf32>
    %cst_19 = arith.constant dense<0.000000e+00> : vector<32xf32>
    %27 = vector.multi_reduction <add>, %25, %cst_19 [1] : vector<32x256xf32> to vector<32xf32>
    %28 = vector.shape_cast %27 : vector<32xf32> to vector<32x1xf32>
    %29 = arith.addf %26, %28 : vector<32x1xf32>
    %c0_20 = arith.constant 0 : index
    %c1_21 = arith.constant 1 : index
    %30 = vector.load %arg13[%c0_20, %c1_21] : memref<32x2xf32, #tpu.memory_space<vmem>>, vector<32x1xf32>
    tpu.vector_store %arg13[%c0_20, %c1_21], %29 {strides = array<i32>} : memref<32x2xf32, #tpu.memory_space<vmem>>, vector<32x1xf32>,
    %c0_i32_22 = arith.constant 0 : i32
    %31 = arith.cmpi eq, %arg0, %c0_i32_22 : i32
    %32 = arith.extui %31 : i1 to i32
    %c0_i32_23 = arith.constant 0 : i32
    %33 = arith.cmpi ne, %32, %c0_i32_23 : i32
    scf.if %33 {
      %c0_24 = arith.constant 0 : index
      %c0_25 = arith.constant 0 : index
      %34 = vector.load %arg13[%c0_24, %c0_25] : memref<32x2xf32, #tpu.memory_space<vmem>>, vector<32x2xf32>
      %35 = tpu.transpose %34, [1, 0] : vector<32x2xf32> -> vector<2x32xf32>
      %cst_26 = arith.constant 3.906250e-03 : f32
      %36 = vector.broadcast %cst_26 : f32 to vector<2x32xf32>
      %37 = arith.mulf %35, %36 : vector<2x32xf32>
      %c0_27 = arith.constant 0 : index
      %c0_28 = arith.constant 0 : index
      %38 = vector.load %arg4[%c0_27, %c0_28] : memref<32x32xf32, #tpu.memory_space<vmem>>, vector<32x32xf32>
      %cst_29 = arith.constant dense<0.000000e+00> : vector<2x32xf32>
      %39 = tpu.matmul %37, %38, %cst_29 {dimension_numbers = #tpu.dot_dimension_numbers<[1], [0], [0], [1], [0, 0, 1, 1], [], []>} : vector<2x32xf32>, vector<32x32xf32>, vector<2x32xf32> -> vector<2x32xf32>
      %c0_30 = arith.constant 0 : index
      %c0_31 = arith.constant 0 : index
      %40 = vector.load %arg5[%c0_30, %c0_31] : memref<1x32xf32, #tpu.memory_space<vmem>>, vector<1x32xf32>
      %41 = vector.broadcast %40 : vector<1x32xf32> to vector<2x32xf32>
      %42 = arith.addf %39, %41 : vector<2x32xf32>
      %cst_32 = arith.constant 0.000000e+00 : f32
      %43 = vector.broadcast %cst_32 : f32 to vector<2x32xf32>
      %44 = arith.subf %43, %42 : vector<2x32xf32>
      %45 = math.exp %44 : vector<2x32xf32>
      %cst_33 = arith.constant 1.000000e+00 : f32
      %46 = vector.broadcast %cst_33 : f32 to vector<2x32xf32>
      %47 = arith.addf %46, %45 : vector<2x32xf32>
      %cst_34 = arith.constant 1.000000e+00 : f32
      %48 = vector.broadcast %cst_34 : f32 to vector<2x32xf32>
      %49 = arith.divf %48, %47 : vector<2x32xf32>
      %50 = arith.mulf %42, %49 : vector<2x32xf32>
      %cst_35 = arith.constant dense<0.000000e+00> : vector<32xf32>
      %51 = vector.multi_reduction <add>, %50, %cst_35 [0] : vector<2x32xf32> to vector<32xf32>
      %52 = vector.shape_cast %51 : vector<32xf32> to vector<1x32xf32>
      %cst_36 = arith.constant 2.000000e+00 : f32
      %53 = vector.broadcast %cst_36 : f32 to vector<1x32xf32>
      %54 = arith.divf %52, %53 : vector<1x32xf32>
      %55 = vector.broadcast %54 : vector<1x32xf32> to vector<2x32xf32>
      %56 = arith.subf %50, %55 : vector<2x32xf32>
      %57 = arith.mulf %56, %56 : vector<2x32xf32>
      %cst_37 = arith.constant dense<0.000000e+00> : vector<32xf32>
      %58 = vector.multi_reduction <add>, %57, %cst_37 [0] : vector<2x32xf32> to vector<32xf32>
      %59 = vector.shape_cast %58 : vector<32xf32> to vector<1x32xf32>
      %cst_38 = arith.constant 2.000000e+00 : f32
      %60 = vector.broadcast %cst_38 : f32 to vector<1x32xf32>
      %61 = arith.divf %59, %60 : vector<1x32xf32>
      %c0_39 = arith.constant 0 : index
      %c0_40 = arith.constant 0 : index
      %62 = vector.load %arg6[%c0_39, %c0_40] : memref<1x32xf32, #tpu.memory_space<vmem>>, vector<1x32xf32>
      %63 = vector.broadcast %54 : vector<1x32xf32> to vector<2x32xf32>
      %64 = arith.subf %50, %63 : vector<2x32xf32>
      %65 = vector.broadcast %62 : vector<1x32xf32> to vector<2x32xf32>
      %66 = arith.mulf %65, %64 : vector<2x32xf32>
      %cst_41 = arith.constant 9.99999974E-6 : f32
      %67 = vector.broadcast %cst_41 : f32 to vector<1x32xf32>
      %68 = arith.addf %61, %67 : vector<1x32xf32>
      %69 = math.rsqrt %68 : vector<1x32xf32>
      %70 = vector.broadcast %69 : vector<1x32xf32> to vector<2x32xf32>
      %71 = arith.mulf %66, %70 : vector<2x32xf32>
      %c0_42 = arith.constant 0 : index
      %c0_43 = arith.constant 0 : index
      %72 = vector.load %arg7[%c0_42, %c0_43] : memref<1x32xf32, #tpu.memory_space<vmem>>, vector<1x32xf32>
      %73 = vector.broadcast %72 : vector<1x32xf32> to vector<2x32xf32>
      %74 = arith.addf %71, %73 : vector<2x32xf32>
      %c0_44 = arith.constant 0 : index
      %c0_45 = arith.constant 0 : index
      %75 = vector.load %arg8[%c0_44, %c0_45] : memref<32x16xf32, #tpu.memory_space<vmem>>, vector<32x16xf32>
      %cst_46 = arith.constant dense<0.000000e+00> : vector<2x16xf32>
      %76 = tpu.matmul %74, %75, %cst_46 {dimension_numbers = #tpu.dot_dimension_numbers<[1], [0], [0], [1], [0, 0, 1, 1], [], []>} : vector<2x32xf32>, vector<32x16xf32>, vector<2x16xf32> -> vector<2x16xf32>
      %c0_47 = arith.constant 0 : index
      %c0_48 = arith.constant 0 : index
      %77 = vector.load %arg9[%c0_47, %c0_48] : memref<1x16xf32, #tpu.memory_space<vmem>>, vector<1x16xf32>
      %78 = vector.broadcast %77 : vector<1x16xf32> to vector<2x16xf32>
      %79 = arith.addf %76, %78 : vector<2x16xf32>
      %cst_49 = arith.constant dense<0.000000e+00> : vector<16xf32>
      %80 = vector.multi_reduction <add>, %79, %cst_49 [0] : vector<2x16xf32> to vector<16xf32>
      %81 = vector.shape_cast %80 : vector<16xf32> to vector<1x16xf32>
      %cst_50 = arith.constant 2.000000e+00 : f32
      %82 = vector.broadcast %cst_50 : f32 to vector<1x16xf32>
      %83 = arith.divf %81, %82 : vector<1x16xf32>
      %84 = vector.broadcast %83 : vector<1x16xf32> to vector<2x16xf32>
      %85 = arith.subf %79, %84 : vector<2x16xf32>
      %86 = arith.mulf %85, %85 : vector<2x16xf32>
      %cst_51 = arith.constant dense<0.000000e+00> : vector<16xf32>
      %87 = vector.multi_reduction <add>, %86, %cst_51 [0] : vector<2x16xf32> to vector<16xf32>
      %88 = vector.shape_cast %87 : vector<16xf32> to vector<1x16xf32>
      %cst_52 = arith.constant 2.000000e+00 : f32
      %89 = vector.broadcast %cst_52 : f32 to vector<1x16xf32>
      %90 = arith.divf %88, %89 : vector<1x16xf32>
      %c0_53 = arith.constant 0 : index
      %c0_54 = arith.constant 0 : index
      %91 = vector.load %arg10[%c0_53, %c0_54] : memref<1x16xf32, #tpu.memory_space<vmem>>, vector<1x16xf32>
      %92 = vector.broadcast %83 : vector<1x16xf32> to vector<2x16xf32>
      %93 = arith.subf %79, %92 : vector<2x16xf32>
      %94 = vector.broadcast %91 : vector<1x16xf32> to vector<2x16xf32>
      %95 = arith.mulf %94, %93 : vector<2x16xf32>
      %cst_55 = arith.constant 9.99999974E-6 : f32
      %96 = vector.broadcast %cst_55 : f32 to vector<1x16xf32>
      %97 = arith.addf %90, %96 : vector<1x16xf32>
      %98 = math.rsqrt %97 : vector<1x16xf32>
      %99 = vector.broadcast %98 : vector<1x16xf32> to vector<2x16xf32>
      %100 = arith.mulf %95, %99 : vector<2x16xf32>
      %c0_56 = arith.constant 0 : index
      %c0_57 = arith.constant 0 : index
      %101 = vector.load %arg11[%c0_56, %c0_57] : memref<1x16xf32, #tpu.memory_space<vmem>>, vector<1x16xf32>
      %102 = vector.broadcast %101 : vector<1x16xf32> to vector<2x16xf32>
      %103 = arith.addf %100, %102 : vector<2x16xf32>
      %c0_58 = arith.constant 0 : index
      %c0_59 = arith.constant 0 : index
      %104 = vector.load %arg12[%c0_58, %c0_59] : memref<2x16xf32, #tpu.memory_space<vmem>>, vector<2x16xf32>
      tpu.vector_store %arg12[%c0_58, %c0_59], %103 {strides = array<i32>} : memref<2x16xf32, #tpu.memory_space<vmem>>, vector<2x16xf32>,
    } else {
    }
    return
  }
  func.func @transform_0(%arg0: i32) -> (i32, i32, i32) {
    %c0_i32 = arith.constant 0 : i32
    %c0_i32_0 = arith.constant 0 : i32
    %c0_i32_1 = arith.constant 0 : i32
    return %c0_i32, %c0_i32_0, %arg0 : i32, i32, i32
  }
  func.func @transform_1(%arg0: i32) -> (i32, i32) {
    %c0_i32 = arith.constant 0 : i32
    %c0_i32_0 = arith.constant 0 : i32
    %c0_i32_1 = arith.constant 0 : i32
    return %c0_i32, %c0_i32_0 : i32, i32
  }
  func.func @transform_2(%arg0: i32) -> (i32, i32) {
    %c0_i32 = arith.constant 0 : i32
    %c0_i32_0 = arith.constant 0 : i32
    %c0_i32_1 = arith.constant 0 : i32
    return %c0_i32, %c0_i32_0 : i32, i32
  }
  func.func @transform_3(%arg0: i32) -> (i32, i32) {
    %c0_i32 = arith.constant 0 : i32
    %c0_i32_0 = arith.constant 0 : i32
    %c0_i32_1 = arith.constant 0 : i32
    return %c0_i32, %c0_i32_0 : i32, i32
  }
  func.func @transform_4(%arg0: i32) -> (i32, i32) {
    %c0_i32 = arith.constant 0 : i32
    %c0_i32_0 = arith.constant 0 : i32
    %c0_i32_1 = arith.constant 0 : i32
    return %c0_i32, %c0_i32_0 : i32, i32
  }
  func.func @transform_5(%arg0: i32) -> (i32, i32) {
    %c0_i32 = arith.constant 0 : i32
    %c0_i32_0 = arith.constant 0 : i32
    %c0_i32_1 = arith.constant 0 : i32
    return %c0_i32, %c0_i32_0 : i32, i32
  }
  func.func @transform_6(%arg0: i32) -> (i32, i32) {
    %c0_i32 = arith.constant 0 : i32
    %c0_i32_0 = arith.constant 0 : i32
    %c0_i32_1 = arith.constant 0 : i32
    return %c0_i32, %c0_i32_0 : i32, i32
  }
  func.func @transform_7(%arg0: i32) -> (i32, i32) {
    %c0_i32 = arith.constant 0 : i32
    %c0_i32_0 = arith.constant 0 : i32
    %c0_i32_1 = arith.constant 0 : i32
    return %c0_i32, %c0_i32_0 : i32, i32
  }
  func.func @transform_8(%arg0: i32) -> (i32, i32) {
    %c0_i32 = arith.constant 0 : i32
    %c0_i32_0 = arith.constant 0 : i32
    %c0_i32_1 = arith.constant 0 : i32
    return %c0_i32, %c0_i32_0 : i32, i32
  }
  func.func @transform_9(%arg0: i32) -> (i32, i32) {
    %c0_i32 = arith.constant 0 : i32
    %c0_i32_0 = arith.constant 0 : i32
    %c0_i32_1 = arith.constant 0 : i32
    return %c0_i32, %c0_i32_0 : i32, i32
  }
  func.func @transform_10(%arg0: i32) -> (i32, i32) {
    %c0_i32 = arith.constant 0 : i32
    %c0_i32_0 = arith.constant 0 : i32
    %c0_i32_1 = arith.constant 0 : i32
    return %c0_i32, %c0_i32_0 : i32, i32
  }
  func.func @transform_11(%arg0: i32) -> (i32, i32) {
    %c0_i32 = arith.constant 0 : i32
    %c0_i32_0 = arith.constant 0 : i32
    %c0_i32_1 = arith.constant 0 : i32
    return %c0_i32, %c0_i32_0 : i32, i32
  }
}

module attributes {stable_mosaic.version = 11 : i64} {
  func.func @encoder_kernel(%arg0: i32, %arg1: memref<2x4x256xf32, #tpu.memory_space<vmem>>, %arg2: memref<32x4xbf16, #tpu.memory_space<vmem>>, %arg3: memref<32x1xf32, #tpu.memory_space<vmem>>, %arg4: memref<32x32xf32, #tpu.memory_space<vmem>>, %arg5: memref<1x32xf32, #tpu.memory_space<vmem>>, %arg6: memref<1x32xf32, #tpu.memory_space<vmem>>, %arg7: memref<1x32xf32, #tpu.memory_space<vmem>>, %arg8: memref<32x16xf32, #tpu.memory_space<vmem>>, %arg9: memref<1x16xf32, #tpu.memory_space<vmem>>, %arg10: memref<1x16xf32, #tpu.memory_space<vmem>>, %arg11: memref<1x16xf32, #tpu.memory_space<vmem>>, %arg12: memref<2x16xf32, #tpu.memory_space<vmem>>, %arg13: memref<32x2xf32, #tpu.memory_space<vmem>>) attributes {dimension_semantics = [#tpu.dimension_semantics<arbitrary>], iteration_bounds = array<i64: 1>, scalar_prefetch = 0 : i64, scratch_operands = 1 : i64, tpu.core_type = #tpu.core_type<tc>, window_params = [{transform_indices = @transform_0, window_bounds = array<i64: 2, 4, 256>}, {pipeline_mode = #tpu.pipeline_mode<synchronous>, transform_indices = @transform_1, window_bounds = array<i64: 32, 4>}, {pipeline_mode = #tpu.pipeline_mode<synchronous>, transform_indices = @transform_2, window_bounds = array<i64: 32, 1>}, {pipeline_mode = #tpu.pipeline_mode<synchronous>, transform_indices = @transform_3, window_bounds = array<i64: 32, 32>}, {pipeline_mode = #tpu.pipeline_mode<synchronous>, transform_indices = @transform_4, window_bounds = array<i64: 1, 32>}, {pipeline_mode = #tpu.pipeline_mode<synchronous>, transform_indices = @transform_5, window_bounds = array<i64: 1, 32>}, {pipeline_mode = #tpu.pipeline_mode<synchronous>, transform_indices = @transform_6, window_bounds = array<i64: 1, 32>}, {pipeline_mode = #tpu.pipeline_mode<synchronous>, transform_indices = @transform_7, window_bounds = array<i64: 32, 16>}, {pipeline_mode = #tpu.pipeline_mode<synchronous>, transform_indices = @transform_8, window_bounds = array<i64: 1, 16>}, {pipeline_mode = #tpu.pipeline_mode<synchronous>, transform_indices = @transform_9, window_bounds = array<i64: 1, 16>}, {pipeline_mode = #tpu.pipeline_mode<synchronous>, transform_indices = @transform_10, window_bounds = array<i64: 1, 16>}, {pipeline_mode = #tpu.pipeline_mode<synchronous>, transform_indices = @transform_11, window_bounds = array<i64: 2, 16>}]} {
    %c0_i32 = arith.constant 0 : i32
    %0 = arith.cmpi eq, %arg0, %c0_i32 : i32
    %1 = arith.extui %0 : i1 to i32
    %c0_i32_0 = arith.constant 0 : i32
    %2 = arith.cmpi ne, %1, %c0_i32_0 : i32
    scf.if %2 {
      %cst_24 = arith.constant 0.000000e+00 : f32
      %34 = vector.broadcast %cst_24 : f32 to vector<32x2xf32>
      %c0_25 = arith.constant 0 : index
      %c0_26 = arith.constant 0 : index
      %35 = vector.load %arg13[%c0_25, %c0_26] : memref<32x2xf32, #tpu.memory_space<vmem>>, vector<32x2xf32>
      tpu.vector_store %arg13[%c0_25, %c0_26], %34 {strides = array<i32>} : memref<32x2xf32, #tpu.memory_space<vmem>>, vector<32x2xf32>,
    } else {
    }
    %c0 = arith.constant 0 : index
    %c0_1 = arith.constant 0 : index
    %3 = vector.load %arg2[%c0, %c0_1] : memref<32x4xbf16, #tpu.memory_space<vmem>>, vector<32x4xbf16>
    %c0_2 = arith.constant 0 : index
    %c0_3 = arith.constant 0 : index
    %4 = vector.load %arg3[%c0_2, %c0_3] : memref<32x1xf32, #tpu.memory_space<vmem>>, vector<32x1xf32>
    %c0_4 = arith.constant 0 : index
    %c0_5 = arith.constant 0 : index
    %c0_6 = arith.constant 0 : index
    %5 = vector.load %arg1[%c0_4, %c0_5, %c0_6] : memref<2x4x256xf32, #tpu.memory_space<vmem>>, vector<1x4x256xf32>
    %6 = vector.shape_cast %5 : vector<1x4x256xf32> to vector<4x256xf32>
    %7 = arith.truncf %6 : vector<4x256xf32> to vector<4x256xbf16>
    %cst = arith.constant dense<0.000000e+00> : vector<32x256xf32>
    %8 = tpu.matmul %3, %7, %cst {dimension_numbers = #tpu.dot_dimension_numbers<[1], [0], [0], [1], [0, 0, 1, 1], [], []>} : vector<32x4xbf16>, vector<4x256xbf16>, vector<32x256xf32> -> vector<32x256xf32>
    %9 = vector.broadcast %4 : vector<32x1xf32> to vector<32x256xf32>
    %10 = arith.addf %8, %9 : vector<32x256xf32>
    %cst_7 = arith.constant 0.000000e+00 : f32
    %11 = vector.broadcast %cst_7 : f32 to vector<32x256xf32>
    %12 = arith.maximumf %10, %11 : vector<32x256xf32>
    %c0_8 = arith.constant 0 : index
    %c0_9 = arith.constant 0 : index
    %13 = vector.load %arg13[%c0_8, %c0_9] : memref<32x2xf32, #tpu.memory_space<vmem>>, vector<32x1xf32>
    %cst_10 = arith.constant dense<0.000000e+00> : vector<32xf32>
    %14 = vector.multi_reduction <add>, %12, %cst_10 [1] : vector<32x256xf32> to vector<32xf32>
    %15 = vector.shape_cast %14 : vector<32xf32> to vector<32x1xf32>
    %16 = arith.addf %13, %15 : vector<32x1xf32>
    %c0_11 = arith.constant 0 : index
    %c0_12 = arith.constant 0 : index
    %17 = vector.load %arg13[%c0_11, %c0_12] : memref<32x2xf32, #tpu.memory_space<vmem>>, vector<32x1xf32>
    tpu.vector_store %arg13[%c0_11, %c0_12], %16 {strides = array<i32>} : memref<32x2xf32, #tpu.memory_space<vmem>>, vector<32x1xf32>,
    %c1 = arith.constant 1 : index
    %c0_13 = arith.constant 0 : index
    %c0_14 = arith.constant 0 : index
    %18 = vector.load %arg1[%c1, %c0_13, %c0_14] : memref<2x4x256xf32, #tpu.memory_space<vmem>>, vector<1x4x256xf32>
    %19 = vector.shape_cast %18 : vector<1x4x256xf32> to vector<4x256xf32>
    %20 = arith.truncf %19 : vector<4x256xf32> to vector<4x256xbf16>
    %cst_15 = arith.constant dense<0.000000e+00> : vector<32x256xf32>
    %21 = tpu.matmul %3, %20, %cst_15 {dimension_numbers = #tpu.dot_dimension_numbers<[1], [0], [0], [1], [0, 0, 1, 1], [], []>} : vector<32x4xbf16>, vector<4x256xbf16>, vector<32x256xf32> -> vector<32x256xf32>
    %22 = vector.broadcast %4 : vector<32x1xf32> to vector<32x256xf32>
    %23 = arith.addf %21, %22 : vector<32x256xf32>
    %cst_16 = arith.constant 0.000000e+00 : f32
    %24 = vector.broadcast %cst_16 : f32 to vector<32x256xf32>
    %25 = arith.maximumf %23, %24 : vector<32x256xf32>
    %c0_17 = arith.constant 0 : index
    %c1_18 = arith.constant 1 : index
    %26 = vector.load %arg13[%c0_17, %c1_18] : memref<32x2xf32, #tpu.memory_space<vmem>>, vector<32x1xf32>
    %cst_19 = arith.constant dense<0.000000e+00> : vector<32xf32>
    %27 = vector.multi_reduction <add>, %25, %cst_19 [1] : vector<32x256xf32> to vector<32xf32>
    %28 = vector.shape_cast %27 : vector<32xf32> to vector<32x1xf32>
    %29 = arith.addf %26, %28 : vector<32x1xf32>
    %c0_20 = arith.constant 0 : index
    %c1_21 = arith.constant 1 : index
    %30 = vector.load %arg13[%c0_20, %c1_21] : memref<32x2xf32, #tpu.memory_space<vmem>>, vector<32x1xf32>
    tpu.vector_store %arg13[%c0_20, %c1_21], %29 {strides = array<i32>} : memref<32x2xf32, #tpu.memory_space<vmem>>, vector<32x1xf32>,
    %c0_i32_22 = arith.constant 0 : i32
    %31 = arith.cmpi eq, %arg0, %c0_i32_22 : i32
    %32 = arith.extui %31 : i1 to i32
    %c0_i32_23 = arith.constant 0 : i32
    %33 = arith.cmpi ne, %32, %c0_i32_23 : i32
    scf.if %33 {
      %c0_24 = arith.constant 0 : index
      %c0_25 = arith.constant 0 : index
      %34 = vector.load %arg13[%c0_24, %c0_25] : memref<32x2xf32, #tpu.memory_space<vmem>>, vector<32x2xf32>
      %35 = tpu.transpose %34, [1, 0] : vector<32x2xf32> -> vector<2x32xf32>
      %cst_26 = arith.constant 3.906250e-03 : f32
      %36 = vector.broadcast %cst_26 : f32 to vector<2x32xf32>
      %37 = arith.mulf %35, %36 : vector<2x32xf32>
      %c0_27 = arith.constant 0 : index
      %c0_28 = arith.constant 0 : index
      %38 = vector.load %arg4[%c0_27, %c0_28] : memref<32x32xf32, #tpu.memory_space<vmem>>, vector<32x32xf32>
      %cst_29 = arith.constant dense<0.000000e+00> : vector<2x32xf32>
      %39 = tpu.matmul %37, %38, %cst_29 {dimension_numbers = #tpu.dot_dimension_numbers<[1], [0], [0], [1], [0, 0, 1, 1], [], []>} : vector<2x32xf32>, vector<32x32xf32>, vector<2x32xf32> -> vector<2x32xf32>
      %c0_30 = arith.constant 0 : index
      %c0_31 = arith.constant 0 : index
      %40 = vector.load %arg5[%c0_30, %c0_31] : memref<1x32xf32, #tpu.memory_space<vmem>>, vector<1x32xf32>
      %41 = vector.broadcast %40 : vector<1x32xf32> to vector<2x32xf32>
      %42 = arith.addf %39, %41 : vector<2x32xf32>
      %cst_32 = arith.constant 0.000000e+00 : f32
      %43 = vector.broadcast %cst_32 : f32 to vector<2x32xf32>
      %44 = arith.subf %43, %42 : vector<2x32xf32>
      %45 = math.exp %44 : vector<2x32xf32>
      %cst_33 = arith.constant 1.000000e+00 : f32
      %46 = vector.broadcast %cst_33 : f32 to vector<2x32xf32>
      %47 = arith.addf %46, %45 : vector<2x32xf32>
      %cst_34 = arith.constant 1.000000e+00 : f32
      %48 = vector.broadcast %cst_34 : f32 to vector<2x32xf32>
      %49 = arith.divf %48, %47 : vector<2x32xf32>
      %50 = arith.mulf %42, %49 : vector<2x32xf32>
      %cst_35 = arith.constant dense<0.000000e+00> : vector<32xf32>
      %51 = vector.multi_reduction <add>, %50, %cst_35 [0] : vector<2x32xf32> to vector<32xf32>
      %52 = vector.shape_cast %51 : vector<32xf32> to vector<1x32xf32>
      %cst_36 = arith.constant 2.000000e+00 : f32
      %53 = vector.broadcast %cst_36 : f32 to vector<1x32xf32>
      %54 = arith.divf %52, %53 : vector<1x32xf32>
      %55 = vector.broadcast %54 : vector<1x32xf32> to vector<2x32xf32>
      %56 = arith.subf %50, %55 : vector<2x32xf32>
      %57 = arith.mulf %56, %56 : vector<2x32xf32>
      %cst_37 = arith.constant dense<0.000000e+00> : vector<32xf32>
      %58 = vector.multi_reduction <add>, %57, %cst_37 [0] : vector<2x32xf32> to vector<32xf32>
      %59 = vector.shape_cast %58 : vector<32xf32> to vector<1x32xf32>
      %cst_38 = arith.constant 2.000000e+00 : f32
      %60 = vector.broadcast %cst_38 : f32 to vector<1x32xf32>
      %61 = arith.divf %59, %60 : vector<1x32xf32>
      %c0_39 = arith.constant 0 : index
      %c0_40 = arith.constant 0 : index
      %62 = vector.load %arg6[%c0_39, %c0_40] : memref<1x32xf32, #tpu.memory_space<vmem>>, vector<1x32xf32>
      %63 = vector.broadcast %54 : vector<1x32xf32> to vector<2x32xf32>
      %64 = arith.subf %50, %63 : vector<2x32xf32>
      %65 = vector.broadcast %62 : vector<1x32xf32> to vector<2x32xf32>
      %66 = arith.mulf %65, %64 : vector<2x32xf32>
      %cst_41 = arith.constant 9.99999974E-6 : f32
      %67 = vector.broadcast %cst_41 : f32 to vector<1x32xf32>
      %68 = arith.addf %61, %67 : vector<1x32xf32>
      %69 = math.rsqrt %68 : vector<1x32xf32>
      %70 = vector.broadcast %69 : vector<1x32xf32> to vector<2x32xf32>
      %71 = arith.mulf %66, %70 : vector<2x32xf32>
      %c0_42 = arith.constant 0 : index
      %c0_43 = arith.constant 0 : index
      %72 = vector.load %arg7[%c0_42, %c0_43] : memref<1x32xf32, #tpu.memory_space<vmem>>, vector<1x32xf32>
      %73 = vector.broadcast %72 : vector<1x32xf32> to vector<2x32xf32>
      %74 = arith.addf %71, %73 : vector<2x32xf32>
      %c0_44 = arith.constant 0 : index
      %c0_45 = arith.constant 0 : index
      %75 = vector.load %arg8[%c0_44, %c0_45] : memref<32x16xf32, #tpu.memory_space<vmem>>, vector<32x16xf32>
      %cst_46 = arith.constant dense<0.000000e+00> : vector<2x16xf32>
      %76 = tpu.matmul %74, %75, %cst_46 {dimension_numbers = #tpu.dot_dimension_numbers<[1], [0], [0], [1], [0, 0, 1, 1], [], []>} : vector<2x32xf32>, vector<32x16xf32>, vector<2x16xf32> -> vector<2x16xf32>
      %c0_47 = arith.constant 0 : index
      %c0_48 = arith.constant 0 : index
      %77 = vector.load %arg9[%c0_47, %c0_48] : memref<1x16xf32, #tpu.memory_space<vmem>>, vector<1x16xf32>
      %78 = vector.broadcast %77 : vector<1x16xf32> to vector<2x16xf32>
      %79 = arith.addf %76, %78 : vector<2x16xf32>
      %cst_49 = arith.constant dense<0.000000e+00> : vector<16xf32>
      %80 = vector.multi_reduction <add>, %79, %cst_49 [0] : vector<2x16xf32> to vector<16xf32>
      %81 = vector.shape_cast %80 : vector<16xf32> to vector<1x16xf32>
      %cst_50 = arith.constant 2.000000e+00 : f32
      %82 = vector.broadcast %cst_50 : f32 to vector<1x16xf32>
      %83 = arith.divf %81, %82 : vector<1x16xf32>
      %84 = vector.broadcast %83 : vector<1x16xf32> to vector<2x16xf32>
      %85 = arith.subf %79, %84 : vector<2x16xf32>
      %86 = arith.mulf %85, %85 : vector<2x16xf32>
      %cst_51 = arith.constant dense<0.000000e+00> : vector<16xf32>
      %87 = vector.multi_reduction <add>, %86, %cst_51 [0] : vector<2x16xf32> to vector<16xf32>
      %88 = vector.shape_cast %87 : vector<16xf32> to vector<1x16xf32>
      %cst_52 = arith.constant 2.000000e+00 : f32
      %89 = vector.broadcast %cst_52 : f32 to vector<1x16xf32>
      %90 = arith.divf %88, %89 : vector<1x16xf32>
      %c0_53 = arith.constant 0 : index
      %c0_54 = arith.constant 0 : index
      %91 = vector.load %arg10[%c0_53, %c0_54] : memref<1x16xf32, #tpu.memory_space<vmem>>, vector<1x16xf32>
      %92 = vector.broadcast %83 : vector<1x16xf32> to vector<2x16xf32>
      %93 = arith.subf %79, %92 : vector<2x16xf32>
      %94 = vector.broadcast %91 : vector<1x16xf32> to vector<2x16xf32>
      %95 = arith.mulf %94, %93 : vector<2x16xf32>
      %cst_55 = arith.constant 9.99999974E-6 : f32
      %96 = vector.broadcast %cst_55 : f32 to vector<1x16xf32>
      %97 = arith.addf %90, %96 : vector<1x16xf32>
      %98 = math.rsqrt %97 : vector<1x16xf32>
      %99 = vector.broadcast %98 : vector<1x16xf32> to vector<2x16xf32>
      %100 = arith.mulf %95, %99 : vector<2x16xf32>
      %c0_56 = arith.constant 0 : index
      %c0_57 = arith.constant 0 : index
      %101 = vector.load %arg11[%c0_56, %c0_57] : memref<1x16xf32, #tpu.memory_space<vmem>>, vector<1x16xf32>
      %102 = vector.broadcast %101 : vector<1x16xf32> to vector<2x16xf32>
      %103 = arith.addf %100, %102 : vector<2x16xf32>
      %c0_58 = arith.constant 0 : index
      %c0_59 = arith.constant 0 : index
      %104 = vector.load %arg12[%c0_58, %c0_59] : memref<2x16xf32, #tpu.memory_space<vmem>>, vector<2x16xf32>
      tpu.vector_store %arg12[%c0_58, %c0_59], %103 {strides = array<i32>} : memref<2x16xf32, #tpu.memory_space<vmem>>, vector<2x16xf32>,
    } else {
    }
    return
  }
  func.func @transform_0(%arg0: i32) -> (i32, i32, i32) {
    %c0_i32 = arith.constant 0 : i32
    %c0_i32_0 = arith.constant 0 : i32
    %c0_i32_1 = arith.constant 0 : i32
    return %c0_i32, %c0_i32_0, %arg0 : i32, i32, i32
  }
  func.func @transform_1(%arg0: i32) -> (i32, i32) {
    %c0_i32 = arith.constant 0 : i32
    %c0_i32_0 = arith.constant 0 : i32
    %c0_i32_1 = arith.constant 0 : i32
    return %c0_i32, %c0_i32_0 : i32, i32
  }
  func.func @transform_2(%arg0: i32) -> (i32, i32) {
    %c0_i32 = arith.constant 0 : i32
    %c0_i32_0 = arith.constant 0 : i32
    %c0_i32_1 = arith.constant 0 : i32
    return %c0_i32, %c0_i32_0 : i32, i32
  }
  func.func @transform_3(%arg0: i32) -> (i32, i32) {
    %c0_i32 = arith.constant 0 : i32
    %c0_i32_0 = arith.constant 0 : i32
    %c0_i32_1 = arith.constant 0 : i32
    return %c0_i32, %c0_i32_0 : i32, i32
  }
  func.func @transform_4(%arg0: i32) -> (i32, i32) {
    %c0_i32 = arith.constant 0 : i32
    %c0_i32_0 = arith.constant 0 : i32
    %c0_i32_1 = arith.constant 0 : i32
    return %c0_i32, %c0_i32_0 : i32, i32
  }
  func.func @transform_5(%arg0: i32) -> (i32, i32) {
    %c0_i32 = arith.constant 0 : i32
    %c0_i32_0 = arith.constant 0 : i32
    %c0_i32_1 = arith.constant 0 : i32
    return %c0_i32, %c0_i32_0 : i32, i32
  }
  func.func @transform_6(%arg0: i32) -> (i32, i32) {
    %c0_i32 = arith.constant 0 : i32
    %c0_i32_0 = arith.constant 0 : i32
    %c0_i32_1 = arith.constant 0 : i32
    return %c0_i32, %c0_i32_0 : i32, i32
  }
  func.func @transform_7(%arg0: i32) -> (i32, i32) {
    %c0_i32 = arith.constant 0 : i32
    %c0_i32_0 = arith.constant 0 : i32
    %c0_i32_1 = arith.constant 0 : i32
    return %c0_i32, %c0_i32_0 : i32, i32
  }
  func.func @transform_8(%arg0: i32) -> (i32, i32) {
    %c0_i32 = arith.constant 0 : i32
    %c0_i32_0 = arith.constant 0 : i32
    %c0_i32_1 = arith.constant 0 : i32
    return %c0_i32, %c0_i32_0 : i32, i32
  }
  func.func @transform_9(%arg0: i32) -> (i32, i32) {
    %c0_i32 = arith.constant 0 : i32
    %c0_i32_0 = arith.constant 0 : i32
    %c0_i32_1 = arith.constant 0 : i32
    return %c0_i32, %c0_i32_0 : i32, i32
  }
  func.func @transform_10(%arg0: i32) -> (i32, i32) {
    %c0_i32 = arith.constant 0 : i32
    %c0_i32_0 = arith.constant 0 : i32
    %c0_i32_1 = arith.constant 0 : i32
    return %c0_i32, %c0_i32_0 : i32, i32
  }
  func.func @transform_11(%arg0: i32) -> (i32, i32) {
    %c0_i32 = arith.constant 0 : i32
    %c0_i32_0 = arith.constant 0 : i32
    %c0_i32_1 = arith.constant 0 : i32
    return %c0_i32, %c0_i32_0 : i32, i32
  }
}

</mosaic_0001>

<bundles_post_ra>
// kernel: tpu_custom_call.1
= control target key start
LH: loop header
LB: loop body
LE: loop exit
PB: predicated region body
PF: predicated region fallthrough
CT: control target
= control target key end

     0   :  { %vm100_vm0 = vcmask 1041408   ;;  %v704_v6 = vmov 0   ;;  %s864_s0 = inlined_call_operand.vmem [shape: f32[2,4,256], index: 0, kind: input, shape index: {}]   ;;  %s865_s1 = inlined_call_operand.vmem [shape: bf16[32,4], index: 1, kind: input, shape index: {}]   ;;  %s866_s2 = inlined_call_operand.vmem [shape: f32[32,1], index: 2, kind: input, shape index: {}]   ;;  %s867_s3 = inlined_call_operand.vmem [shape: f32[32,32], index: 3, kind: input, shape index: {}]   ;;  %s868_s4 = inlined_call_operand.vmem [shape: f32[1,32], index: 4, kind: input, shape index: {}]   ;;  %s869_s5 = inlined_call_operand.vmem [shape: f32[1,32], index: 5, kind: input, shape index: {}]   ;;  %s870_s6 = inlined_call_operand.vmem [shape: f32[1,32], index: 6, kind: input, shape index: {}]   ;;  %s871_s7 = inlined_call_operand.vmem [shape: f32[32,16], index: 7, kind: input, shape index: {}]   ;;  %s872_s8 = inlined_call_operand.vmem [shape: f32[1,16], index: 8, kind: input, shape index: {}]   ;;  %s873_s9 = inlined_call_operand.vmem [shape: f32[1,16], index: 9, kind: input, shape index: {}]   ;;  %s874_s10 = inlined_call_operand.vmem [shape: f32[1,16], index: 10, kind: input, shape index: {}]   ;;  %s875_s11 = inlined_call_operand.hbm [shape: f32[2,16], index: 11, kind: output, shape index: {}]  }
   0x1   :  { %v57_v0 = vld [vmem:[%s864_s0] sm:$0xff]  ;;  %v605_v1 = vld [vmem:[%s864_s0 + $0x8] sm:$0xff]  ;;  %139 = vmatprep.mubr.bf16.mxu0 %v704_v6  ;;  %238 = vmatprep.mubr.bf16.mxu1 %v704_v6  ;;  %v55_v12 = vld [vmem:[%s866_s2 + $0x10] sm:$0xff] }
   0x2   :  { %v59_v2 = vcombine.high %v57_v0, %v57_v0  ;;  %v196_v3 = vcombine.high %v605_v1, %v605_v1  ;;  %v61_v4 = vpack.c.bf16 %v57_v0, %v57_v0  ;;  %v198_v5 = vpack.c.bf16 %v605_v1, %v605_v1  ;;  %666 = vset.pattern.permute.xlu0 %v704_v6  ;;  %v53_v7 = vld [vmem:[%s866_s2] sm:$0xff]  ;;  %v54_v13 = vld [vmem:[%s866_s2 + $0x8] sm:$0xff] }
   0x3   :  { %65 = vperm.xlu0 %666, %v53_v7   ;;  %667 = vset.pattern.permute.xlu1 %v704_v6 }
   0x4   :  { %v62_v8 = vpack.c.bf16 %v59_v2, %v59_v2  ;;  %v199_v9 = vpack.c.bf16 %v196_v3, %v196_v3  ;;  %v102_v10 = vsel %vm100_vm0, %v61_v4, 0  ;;  %v201_v11 = vsel %vm100_vm0, %v198_v5, 0  ;;  %75 = vperm.xlu1 %667, %v55_v12  }
   0x5   :  { %16 = vsyncpa [#allocation4], 0  ;;  %v670_v14 = vld [vmem:[%s865_s1] sm:$0xff]   ;;  %v56_v15 = vld [vmem:[%s866_s2 + $0x18] sm:$0xff]  ;;  %vm93_vm1 = vcmask 31744   ;;  %vm44_vm2 = vcmask 15360  }
   0x6   :  { %602 = vmatprep.subr.msk.bf16.mxu0 %vm100_vm0, %v62_v8  ;;  %606 = vmatprep.subr.msk.bf16.mxu1 %vm100_vm0, %v199_v9  ;;  %v671_v16 = vld [vmem:[%s865_s1 + $0x8] sm:$0xff]   ;;  %vm188_vm3 = vcmask 7168   ;;  %vm287_vm4 = vcmask 15368   ;;  %vm707_vm5 = vmmov 0   ;;  %vm343_vm6 = vcmask 261120   ;;  %s708_s1 = smov [#allocation3]  }
   0x7   :  { %108 = vmatpush1.bf16.msra.mxu0 %v102_v10  ;;  %207 = vmatpush1.bf16.msra.mxu1 %v201_v11  ;;  %v705_v11 = vmov 0.0   ;;  %vm424_vm7 = vcmask 254976   ;;  %vm547_vm8 = vcmask 123904   ;;  %s592_s2 = sshll.u32 %s708_s1, 4  ;;  %s593_s2 = int_to_ptr.vmem [resolvable:$true] %s592_s2 }
   0x8   :  { %70 = vperm.xlu0 %666, %v54_v13   ;;  %80 = vperm.xlu1 %667, %v56_v15   ;;  %45 = vst.msk [vmem:[#allocation2] sm:$0xff] %vm44_vm2, %v705_v11  ;;  %46 = vst.msk [vmem:[#allocation2 + $0x8] sm:$0xff] %vm44_vm2, %v705_v11  ;;  %v333_v15 = vld [vmem:[%s867_s3 + $0x8] sm:$0xff]  ;;  %s680_s13 = scalar_lea.vmem %s593_s2, 32  ;;  %p685_p1 = scmp.lt.s32.totalorder %s593_s2, %s593_s2 }
   0x9   :  { %47 = vst.msk [vmem:[#allocation2 + $0x10] sm:$0xff] %vm44_vm2, %v705_v11  ;;  %48 = vst.msk [vmem:[#allocation2 + $0x18] sm:$0xff] %vm44_vm2, %v705_v11  ;;  %p681_p0 = scmp.ne.s32.totalorder %s593_s2, %s680_s13  ;;  %p686_p2 = scmp.lt.s32.totalorder %s680_s13, %s680_s13 }
   0xa   :  { %603 = vmatmul.mubr.msk.bf16.vlgmr.msra.gmra.mrb[0].mxu0 %vm93_vm1, %v670_v14  ;;  %607 = vmatmul.mubr.msk.bf16.vlgmr.msra.gmra.mrb[0].mxu1 %vm93_vm1, %v670_v14  ;;  %v332_v14 = vld [vmem:[%s867_s3] sm:$0xff] }
   0xb   :  { %149 = vmatprep.mubr.bf16.mxu0 %v704_v6  ;;  %248 = vmatprep.mubr.bf16.mxu1 %v704_v6  ;;  %p687_p3 = por %p686_p2, %p685_p1 }
   0xd   :  { %p688_p4 = pnand %p687_p3, %p681_p0 }
  0x12   :  { %604 = vmatmul.mubr.msk.bf16.gmra.mrb[4].mxu0 %vm93_vm1, %v671_v16  ;;  %608 = vmatmul.mubr.msk.bf16.gmra.mrb[4].mxu1 %vm93_vm1, %v671_v16  ;;  %v334_v16 = vld [vmem:[%s867_s3 + $0x10] sm:$0xff] }
  0x13   :  { %635 = vmatprep.mubr.msk.f32.mxu0 %vm707_vm5, %v705_v11  ;;  %646 = vmatprep.mubr.msk.f32.mxu1 %vm707_vm5, %v705_v11 }
  0x82   :  { %v66_v17 = vpop.permute.xlu0 %65 }
  0x83   :  { %v76_v19 = vpop.permute.xlu1 %75 }
  0x87   :  { %v71_v18 = vpop.permute.xlu0 %70  ;;  %v81_v46 = vpop.permute.xlu1 %80 }
  0xdd   :  { %v141_v20 = vpop.f32.mrb[0].mxu0  ;;  %v240_v21 = vpop.f32.mrb[0].mxu1 }
  0xde   :  { %v142_v22 = vadd.f32 %v141_v20, %v66_v17  ;;  %v241_v23 = vadd.f32 %v240_v21, %v66_v17  ;;  %v143_v24 = vpop.f32.mrb[1].mxu0  ;;  %v242_v25 = vpop.f32.mrb[1].mxu1  ;;  %v168_v21 = vld [vmem:[#allocation2] sm:$0xff] }
  0xdf   :  { %v144_v26 = vadd.f32 %v143_v24, %v66_v17  ;;  %v243_v27 = vadd.f32 %v242_v25, %v66_v17  ;;  %v145_v28 = vpop.f32.mrb[2].mxu0  ;;  %v244_v29 = vpop.f32.mrb[2].mxu1  ;;  %v706_v17 = vmov 0.0|0.0  }
  0xe0   :  { %v160_v30 = vmax.f32 %v142_v22, 0.0  ;;  %v259_v31 = vmax.f32 %v241_v23, 0.0  ;;  %v146_v32 = vadd.f32 %v145_v28, %v71_v18  ;;  %v245_v33 = vadd.f32 %v244_v29, %v71_v18  ;;  %v147_v34 = vpop.f32.mrb[3].mxu0  ;;  %v246_v35 = vpop.f32.mrb[3].mxu1  ;;  %649 = vmatprep.subr.bf16.mxu0 %v706_v17  ;;  %655 = vmatprep.subr.bf16.mxu1 %v706_v17  ;;  %v169_v23 = vld [vmem:[#allocation2 + $0x8] sm:$0xff] }
  0xe1   :  { %v161_v36 = vmax.f32 %v144_v26, 0.0  ;;  %v260_v37 = vmax.f32 %v243_v27, 0.0  ;;  %v148_v38 = vadd.f32 %v147_v34, %v71_v18  ;;  %v247_v39 = vadd.f32 %v246_v35, %v71_v18  ;;  %v170_v27 = vld [vmem:[#allocation2 + $0x10] sm:$0xff] }
  0xe2   :  { %v162_v40 = vmax.f32 %v146_v32, 0.0  ;;  %v261_v41 = vmax.f32 %v245_v33, 0.0  ;;  %v650_v18 = vpack.c.bf16 %v333_v15, %v332_v14  ;;  %v171_v32 = vld [vmem:[#allocation2 + $0x18] sm:$0xff] }
  0xe3   :  { %v163_v42 = vmax.f32 %v148_v38, 0.0  ;;  %v262_v43 = vmax.f32 %v247_v39, 0.0  ;;  %v172_v44 = vadd.f32 %v161_v36, %v160_v30  ;;  %v271_v45 = vadd.f32 %v260_v37, %v259_v31 }
  0xe4   :  { %651 = vmatpush3.bf16.msra.mxu0 %v650_v18 }
  0xe5   :  { %v151_v47 = vpop.f32.mrb[4].mxu0  ;;  %v250_v48 = vpop.f32.mrb[4].mxu1  ;;  %173 = vadd.xlane.f32.xlu0 %v172_v44  ;;  %v175_v49 = vadd.f32 %v163_v42, %v162_v40  ;;  %v274_v50 = vadd.f32 %v262_v43, %v261_v41  ;;  %652 = vmatprep.subr.bf16.mxu0 %v706_v17 }
  0xe6   :  { %v152_v51 = vadd.f32 %v151_v47, %v76_v19  ;;  %v251_v52 = vadd.f32 %v250_v48, %v76_v19  ;;  %v153_v53 = vpop.f32.mrb[5].mxu0  ;;  %v252_v54 = vpop.f32.mrb[5].mxu1 }
  0xe7   :  { %v154_v55 = vadd.f32 %v153_v53, %v76_v19  ;;  %v253_v56 = vadd.f32 %v252_v54, %v76_v19  ;;  %v155_v57 = vpop.f32.mrb[6].mxu0  ;;  %v254_v58 = vpop.f32.mrb[6].mxu1  ;;  %176 = vadd.xlane.f32.xlu1 %v175_v49  ;;  %v335_v19 = vld [vmem:[%s867_s3 + $0x18] sm:$0xff]  ;;  %v465_v54 = vld [vmem:[%s871_s7 + $0x10] sm:$0xff] }
  0xe8   :  { %v164_v59 = vmax.f32 %v152_v51, 0.0  ;;  %v263_v60 = vmax.f32 %v251_v52, 0.0  ;;  %v156_v61 = vadd.f32 %v155_v57, %v81_v46  ;;  %v255_v62 = vadd.f32 %v254_v58, %v81_v46  ;;  %v157_v63 = vpop.f32.mrb[7].mxu0  ;;  %v256_v0 = vpop.f32.mrb[7].mxu1  ;;  %v463_v51 = vld [vmem:[%s871_s7] sm:$0xff]  ;;  %v464_v52 = vld [vmem:[%s871_s7 + $0x8] sm:$0xff] }
  0xe9   :  { %v165_v1 = vmax.f32 %v154_v55, 0.0  ;;  %v264_v2 = vmax.f32 %v253_v56, 0.0  ;;  %v158_v3 = vadd.f32 %v157_v63, %v81_v46  ;;  %v257_v4 = vadd.f32 %v256_v0, %v81_v46  ;;  %v466_v55 = vld [vmem:[%s871_s7 + $0x18] sm:$0xff]  ;;  %v609_v57 = vld [vmem:[%s868_s4] ss:$0 sm:$0xff] }
  0xea   :  { %v166_v5 = vmax.f32 %v156_v61, 0.0  ;;  %v265_v6 = vmax.f32 %v255_v62, 0.0  ;;  %v653_v20 = vpack.c.bf16 %v335_v19, %v334_v16  ;;  %v656_v53 = vpack.c.bf16 %v464_v52, %v463_v51  ;;  %v615_v51 = vld [vmem:[%s873_s9] ss:$0 sm:$0xff] }
  0xeb   :  { %v167_v7 = vmax.f32 %v158_v3, 0.0  ;;  %v266_v8 = vmax.f32 %v257_v4, 0.0  ;;  %272 = vadd.xlane.f32.xlu1 %v271_v45  ;;  %v178_v9 = vadd.f32 %v165_v1, %v164_v59  ;;  %v277_v10 = vadd.f32 %v264_v2, %v263_v60 }
  0xec   :  { %654 = vmatpush3.bf16.msra.mxu0 %v653_v20  ;;  %657 = vmatpush3.bf16.msra.mxu1 %v656_v53  ;;  %v659_v56 = vpack.c.bf16 %v466_v55, %v465_v54  ;;  %v616_v54 = vld [vmem:[%s874_s10] ss:$0 sm:$0xff] }
  0xed   :  { %179 = vadd.xlane.f32.xlu0 %v178_v9  ;;  %v181_v12 = vadd.f32 %v167_v7, %v166_v5  ;;  %v280_v13 = vadd.f32 %v266_v8, %v265_v6  ;;  %658 = vmatprep.subr.bf16.mxu1 %v706_v17 }
  0xef   :  { %278 = vadd.xlane.f32.xlu1 %v277_v10 }
  0xf0   :  { %660 = vmatpush3.bf16.msra.mxu1 %v659_v56 }
  0xf1   :  { %182 = vadd.xlane.f32.xlu0 %v181_v12 }
  0xf5   :  { %275 = vadd.xlane.f32.xlu0 %v274_v50 }
  0xf9   :  { %281 = vadd.xlane.f32.xlu0 %v280_v13 }
 0x172   :  { %v174_v22 = vpop.xlane.xlu0 %173 }
 0x173   :  { %v184_v24 = vadd.f32 %v174_v22, %v168_v21  ;;  %v611_v22 = vld [vmem:[%s869_s5] ss:$0 sm:$0xff] }
 0x174   :  { %v177_v25 = vpop.xlane.xlu1 %176 }
 0x175   :  { %189 = vst.msk [vmem:[#allocation2] sm:$0xff] %vm188_vm3, %v184_v24  ;;  %v185_v26 = vadd.f32 %v177_v25, %v169_v23  ;;  %v612_v25 = vld [vmem:[%s870_s6] ss:$0 sm:$0xff] }
 0x177   :  { %190 = vst.msk [vmem:[#allocation2 + $0x8] sm:$0xff] %vm188_vm3, %v185_v26 }
 0x178   :  { %v273_v30 = vpop.xlane.xlu1 %272 }
 0x17a   :  { %v180_v28 = vpop.xlane.xlu0 %179 }
 0x17b   :  { %v186_v29 = vadd.f32 %v180_v28, %v170_v27  ;;  %v613_v28 = vld [vmem:[%s872_s8] ss:$0 sm:$0xff] }
 0x17c   :  { %v267_v31 = vld [vmem:[#allocation2] sm:$0xff]  ;;  %v279_v39 = vpop.xlane.xlu1 %278 }
 0x17d   :  { %v283_v33 = vadd.f32 %v273_v30, %v267_v31  ;;  %191 = vst.msk [vmem:[#allocation2 + $0x10] sm:$0xff] %vm188_vm3, %v186_v29 }
 0x17e   :  { %v183_v34 = vpop.xlane.xlu0 %182  ;;  %v268_v37 = vld [vmem:[#allocation2 + $0x8] sm:$0xff] }
 0x17f   :  { %288 = vst.msk [vmem:[#allocation2] sm:$0xff] %vm287_vm4, %v283_v33  ;;  %v187_v35 = vadd.f32 %v183_v34, %v171_v32 }
 0x181   :  { %192 = vst.msk [vmem:[#allocation2 + $0x18] sm:$0xff] %vm188_vm3, %v187_v35 }
 0x182   :  { %v276_v36 = vpop.xlane.xlu0 %275 }
 0x183   :  { %v284_v38 = vadd.f32 %v276_v36, %v268_v37 }
 0x184   :  { %v269_v40 = vld [vmem:[#allocation2 + $0x10] sm:$0xff] }
 0x185   :  { %v285_v41 = vadd.f32 %v279_v39, %v269_v40  ;;  %289 = vst.msk [vmem:[#allocation2 + $0x8] sm:$0xff] %vm287_vm4, %v284_v38 }
 0x186   :  { %v295_v42 = vld [vmem:[#allocation2] sm:$0xff]  ;;  %v282_v43 = vpop.xlane.xlu0 %281 }
 0x187   :  { %290 = vst.msk [vmem:[#allocation2 + $0x10] sm:$0xff] %vm287_vm4, %v285_v41  ;;  %299 = vxpose.xlu1.b32.start [1/4] (short) (narrow) %v295_v42, 8 }
 0x188   :  { %v270_v44 = vld [vmem:[#allocation2 + $0x18] sm:$0xff] }
 0x189   :  { %v286_v45 = vadd.f32 %v282_v43, %v270_v44 }
 0x18b   :  { %291 = vst.msk [vmem:[#allocation2 + $0x18] sm:$0xff] %vm287_vm4, %v286_v45 }
 0x18c   :  { %v296_v46 = vld [vmem:[#allocation2 + $0x8] sm:$0xff] }
 0x18d   :  { %300 = vxpose.xlu1.b32.cont [2/4] (short) (narrow) %v296_v46, 8 }
 0x18e   :  { %v297_v47 = vld [vmem:[#allocation2 + $0x10] sm:$0xff] }
 0x191   :  { %301 = vxpose.xlu1.b32.cont [3/4] (short) (narrow) %v297_v47, 8 }
 0x192   :  { %v298_v48 = vld [vmem:[#allocation2 + $0x18] sm:$0xff] }
 0x195   :  { %302 = vxpose.xlu1.b32.end [4/4] (short) (narrow) %v298_v48, 8 }
 0x209   :  { %v315_v49 = vpop.trf.xlu1 }
 0x20a   :  { %v331_v50 = vmul.f32 0.00390625, %v315_v49 }
 0x20c   :  { %636 = vmatmul.mubr.msk.f32.vlgmr.msra.gmra.mrb[8].mxu0 %vm343_vm6, %v331_v50 }
 0x2df   :  { %v413_v58 = vpop.f32.mrb[8].mxu0 }
 0x2e0   :  { %v414_v59 = vadd.f32 %v609_v57, %v413_v58  ;;  %v637_v60 = vpop.f32.mrb[9].mxu0 }
 0x2e2   :  { %v417_v61 = vsub.f32 0.0, %v414_v59 }
 0x2e4   :  { %v418_v62 = vmul.f32 1.442695, %v417_v61 }
 0x2e6   :  { %672 = vpow2.f32 %v418_v62 }
 0x2f0   :  { %v673_v63 = vpop.eup %672 }
 0x2f1   :  { %v420_v0 = vadd.f32 1.0, %v673_v63 }
 0x2f3   :  { %674 = vrcp.f32 %v420_v0 }
 0x2fd   :  { %v675_v1 = vpop.eup %674 }
 0x2fe   :  { %v423_v2 = vmul.f32 %v675_v1, %v414_v59 }
 0x300   :  { %v425_v3 = vsel %vm424_vm7, %v423_v2, 0.0 }
 0x301   :  { %v426_v4 = vrot.slane %v425_v3, 4 }
 0x303   :  { %v427_v5 = vadd.f32 %v426_v4, %v425_v3 }
 0x305   :  { %v428_v6 = vrot.slane %v427_v5, 2 }
 0x307   :  { %v429_v7 = vadd.f32 %v428_v6, %v427_v5 }
 0x309   :  { %v430_v8 = vrot.slane %v429_v7, 1 }
 0x30b   :  { %v431_v9 = vadd.f32 %v430_v8, %v429_v7 }
 0x30d   :  { %v433_v10 = vmul.f32 0.5, %v431_v9 }
 0x30f   :  { %v434_v11 = vsub.f32 %v423_v2, %v433_v10 }
 0x311   :  { %v435_v12 = vmul.f32 %v434_v11, %v434_v11  ;;  %v451_v23 = vmul.f32 %v611_v22, %v434_v11 }
 0x313   :  { %v436_v13 = vsel %vm424_vm7, %v435_v12, 0.0 }
 0x314   :  { %v437_v14 = vrot.slane %v436_v13, 4 }
 0x316   :  { %v438_v15 = vadd.f32 %v437_v14, %v436_v13 }
 0x318   :  { %v439_v16 = vrot.slane %v438_v15, 2 }
 0x31a   :  { %v440_v17 = vadd.f32 %v439_v16, %v438_v15 }
 0x31c   :  { %v441_v18 = vrot.slane %v440_v17, 1 }
 0x31e   :  { %v442_v19 = vadd.f32 %v441_v18, %v440_v17 }
 0x320   :  { %v443_v20 = vmul.f32 0.5, %v442_v19 }
 0x322   :  { %v452_v21 = vadd.f32 1e-05, %v443_v20 }
 0x324   :  { %676 = vrsqrt.f32 %v452_v21 }
 0x32e   :  { %v677_v24 = vpop.eup %676 }
 0x32f   :  { %v454_v26 = vmul.f32 %v677_v24, %v451_v23 }
 0x331   :  { %v462_v27 = vadd.f32 %v612_v25, %v454_v26 }
 0x333   :  { %647 = vmatmul.mubr.msk.f32.vlgmr.msra.gmra.mrb[8].mxu1 %vm343_vm6, %v462_v27 }
 0x406   :  { %v543_v29 = vpop.f32.mrb[8].mxu1 }
 0x407   :  { %v544_v30 = vadd.f32 %v613_v28, %v543_v29  ;;  %v648_v31 = vpop.f32.mrb[9].mxu1 }
 0x409   :  { %v548_v32 = vsel %vm547_vm8, %v544_v30, 0.0 }
 0x40a   :  { %v549_v33 = vrot.slane %v548_v32, 4 }
 0x40c   :  { %v550_v34 = vadd.f32 %v549_v33, %v548_v32 }
 0x40e   :  { %v551_v35 = vrot.slane %v550_v34, 2 }
 0x410   :  { %v552_v36 = vadd.f32 %v551_v35, %v550_v34 }
 0x412   :  { %v553_v37 = vrot.slane %v552_v36, 1 }
 0x414   :  { %v554_v38 = vadd.f32 %v553_v37, %v552_v36 }
 0x416   :  { %v555_v39 = vmul.f32 0.5, %v554_v38 }
 0x418   :  { %v556_v40 = vsub.f32 %v544_v30, %v555_v39 }
 0x41a   :  { %v557_v41 = vmul.f32 %v556_v40, %v556_v40  ;;  %v573_v52 = vmul.f32 %v615_v51, %v556_v40 }
 0x41c   :  { %v558_v42 = vsel %vm547_vm8, %v557_v41, 0.0 }
 0x41d   :  { %v559_v43 = vrot.slane %v558_v42, 4 }
 0x41f   :  { %v560_v44 = vadd.f32 %v559_v43, %v558_v42 }
 0x421   :  { %v561_v45 = vrot.slane %v560_v44, 2 }
 0x423   :  { %v562_v46 = vadd.f32 %v561_v45, %v560_v44 }
 0x425   :  { %v563_v47 = vrot.slane %v562_v46, 1 }
 0x427   :  { %v564_v48 = vadd.f32 %v563_v47, %v562_v46 }
 0x429   :  { %v565_v49 = vmul.f32 0.5, %v564_v48 }
 0x42b   :  { %v574_v50 = vadd.f32 1e-05, %v565_v49 }
 0x42d   :  { %678 = vrsqrt.f32 %v574_v50 }
 0x437   :  { %v679_v53 = vpop.eup %678 }
 0x438   :  { %v576_v55 = vmul.f32 %v679_v53, %v573_v52 }
 0x43a   :  { %v584_v56 = vadd.f32 %v616_v54, %v576_v55 }
 0x43c   :  { %585 = vst.msk [vmem:[#allocation3] sm:$0x3] %vm547_vm8, %v584_v56 }
 0x43d   :  { %691 = shalt.err (!%p688_p4)
}
 0x43e   :  { %s692_s15 = scalar_lea.hbm %s875_s11, 32 }
 0x43f   :  { %p693_p5 = scmp.ne.s32.totalorder %s875_s11, %s692_s15  ;;  %p696_p6 = scmp.lt.u32.totalorder %s692_s15, %s875_s11 }
 0x441   :  { %p698_p7 = pnand %p696_p6, %p693_p5 }
 0x443   :  { %701 = shalt.err (!%p698_p7)
}
 0x444   :  { %595 = dma.vmem_to_hbm [thread:$0]  %s593_s2, 32, %s875_s11, [#allocation4]  }
 0x445   :  { %702 = dma.done.wait [#allocation4], 32  }
 0x446   :  { %703 = vsyncadd [#allocation4], 4294967264 }
 0x447   :  { %599 = vsyncpa [#allocation4], 1 }

// kernel: tpu_custom_call.1
= control target key start
LH: loop header
LB: loop body
LE: loop exit
PB: predicated region body
PF: predicated region fallthrough
CT: control target
= control target key end

     0   :  { %vm100_vm0 = vcmask 1041408   ;;  %v704_v6 = vmov 0   ;;  %s864_s0 = inlined_call_operand.vmem [shape: f32[2,4,256], index: 0, kind: input, shape index: {}]   ;;  %s865_s1 = inlined_call_operand.vmem [shape: bf16[32,4], index: 1, kind: input, shape index: {}]   ;;  %s866_s2 = inlined_call_operand.vmem [shape: f32[32,1], index: 2, kind: input, shape index: {}]   ;;  %s867_s3 = inlined_call_operand.vmem [shape: f32[32,32], index: 3, kind: input, shape index: {}]   ;;  %s868_s4 = inlined_call_operand.vmem [shape: f32[1,32], index: 4, kind: input, shape index: {}]   ;;  %s869_s5 = inlined_call_operand.vmem [shape: f32[1,32], index: 5, kind: input, shape index: {}]   ;;  %s870_s6 = inlined_call_operand.vmem [shape: f32[1,32], index: 6, kind: input, shape index: {}]   ;;  %s871_s7 = inlined_call_operand.vmem [shape: f32[32,16], index: 7, kind: input, shape index: {}]   ;;  %s872_s8 = inlined_call_operand.vmem [shape: f32[1,16], index: 8, kind: input, shape index: {}]   ;;  %s873_s9 = inlined_call_operand.vmem [shape: f32[1,16], index: 9, kind: input, shape index: {}]   ;;  %s874_s10 = inlined_call_operand.vmem [shape: f32[1,16], index: 10, kind: input, shape index: {}]   ;;  %s875_s11 = inlined_call_operand.hbm [shape: f32[2,16], index: 11, kind: output, shape index: {}]  }
   0x1   :  { %v57_v0 = vld [vmem:[%s864_s0] sm:$0xff]  ;;  %v605_v1 = vld [vmem:[%s864_s0 + $0x8] sm:$0xff]  ;;  %139 = vmatprep.mubr.bf16.mxu0 %v704_v6  ;;  %238 = vmatprep.mubr.bf16.mxu1 %v704_v6  ;;  %v55_v12 = vld [vmem:[%s866_s2 + $0x10] sm:$0xff] }
   0x2   :  { %v59_v2 = vcombine.high %v57_v0, %v57_v0  ;;  %v196_v3 = vcombine.high %v605_v1, %v605_v1  ;;  %v61_v4 = vpack.c.bf16 %v57_v0, %v57_v0  ;;  %v198_v5 = vpack.c.bf16 %v605_v1, %v605_v1  ;;  %666 = vset.pattern.permute.xlu0 %v704_v6  ;;  %v53_v7 = vld [vmem:[%s866_s2] sm:$0xff]  ;;  %v54_v13 = vld [vmem:[%s866_s2 + $0x8] sm:$0xff] }
   0x3   :  { %65 = vperm.xlu0 %666, %v53_v7   ;;  %667 = vset.pattern.permute.xlu1 %v704_v6 }
   0x4   :  { %v62_v8 = vpack.c.bf16 %v59_v2, %v59_v2  ;;  %v199_v9 = vpack.c.bf16 %v196_v3, %v196_v3  ;;  %v102_v10 = vsel %vm100_vm0, %v61_v4, 0  ;;  %v201_v11 = vsel %vm100_vm0, %v198_v5, 0  ;;  %75 = vperm.xlu1 %667, %v55_v12  }
   0x5   :  { %16 = vsyncpa [#allocation4], 0  ;;  %v670_v14 = vld [vmem:[%s865_s1] sm:$0xff]   ;;  %v56_v15 = vld [vmem:[%s866_s2 + $0x18] sm:$0xff]  ;;  %vm93_vm1 = vcmask 31744   ;;  %vm44_vm2 = vcmask 15360  }
   0x6   :  { %602 = vmatprep.subr.msk.bf16.mxu0 %vm100_vm0, %v62_v8  ;;  %606 = vmatprep.subr.msk.bf16.mxu1 %vm100_vm0, %v199_v9  ;;  %v671_v16 = vld [vmem:[%s865_s1 + $0x8] sm:$0xff]   ;;  %vm188_vm3 = vcmask 7168   ;;  %vm287_vm4 = vcmask 15368   ;;  %vm707_vm5 = vmmov 0   ;;  %vm343_vm6 = vcmask 261120   ;;  %s708_s1 = smov [#allocation3]  }
   0x7   :  { %108 = vmatpush1.bf16.msra.mxu0 %v102_v10  ;;  %207 = vmatpush1.bf16.msra.mxu1 %v201_v11  ;;  %v705_v11 = vmov 0.0   ;;  %vm424_vm7 = vcmask 254976   ;;  %vm547_vm8 = vcmask 123904   ;;  %s592_s2 = sshll.u32 %s708_s1, 4  ;;  %s593_s2 = int_to_ptr.vmem [resolvable:$true] %s592_s2 }
   0x8   :  { %70 = vperm.xlu0 %666, %v54_v13   ;;  %80 = vperm.xlu1 %667, %v56_v15   ;;  %45 = vst.msk [vmem:[#allocation2] sm:$0xff] %vm44_vm2, %v705_v11  ;;  %46 = vst.msk [vmem:[#allocation2 + $0x8] sm:$0xff] %vm44_vm2, %v705_v11  ;;  %v333_v15 = vld [vmem:[%s867_s3 + $0x8] sm:$0xff]  ;;  %s680_s13 = scalar_lea.vmem %s593_s2, 32  ;;  %p685_p1 = scmp.lt.s32.totalorder %s593_s2, %s593_s2 }
   0x9   :  { %47 = vst.msk [vmem:[#allocation2 + $0x10] sm:$0xff] %vm44_vm2, %v705_v11  ;;  %48 = vst.msk [vmem:[#allocation2 + $0x18] sm:$0xff] %vm44_vm2, %v705_v11  ;;  %p681_p0 = scmp.ne.s32.totalorder %s593_s2, %s680_s13  ;;  %p686_p2 = scmp.lt.s32.totalorder %s680_s13, %s680_s13 }
   0xa   :  { %603 = vmatmul.mubr.msk.bf16.vlgmr.msra.gmra.mrb[0].mxu0 %vm93_vm1, %v670_v14  ;;  %607 = vmatmul.mubr.msk.bf16.vlgmr.msra.gmra.mrb[0].mxu1 %vm93_vm1, %v670_v14  ;;  %v332_v14 = vld [vmem:[%s867_s3] sm:$0xff] }
   0xb   :  { %149 = vmatprep.mubr.bf16.mxu0 %v704_v6  ;;  %248 = vmatprep.mubr.bf16.mxu1 %v704_v6  ;;  %p687_p3 = por %p686_p2, %p685_p1 }
   0xd   :  { %p688_p4 = pnand %p687_p3, %p681_p0 }
  0x12   :  { %604 = vmatmul.mubr.msk.bf16.gmra.mrb[4].mxu0 %vm93_vm1, %v671_v16  ;;  %608 = vmatmul.mubr.msk.bf16.gmra.mrb[4].mxu1 %vm93_vm1, %v671_v16  ;;  %v334_v16 = vld [vmem:[%s867_s3 + $0x10] sm:$0xff] }
  0x13   :  { %635 = vmatprep.mubr.msk.f32.mxu0 %vm707_vm5, %v705_v11  ;;  %646 = vmatprep.mubr.msk.f32.mxu1 %vm707_vm5, %v705_v11 }
  0x82   :  { %v66_v17 = vpop.permute.xlu0 %65 }
  0x83   :  { %v76_v19 = vpop.permute.xlu1 %75 }
  0x87   :  { %v71_v18 = vpop.permute.xlu0 %70  ;;  %v81_v46 = vpop.permute.xlu1 %80 }
  0xdd   :  { %v141_v20 = vpop.f32.mrb[0].mxu0  ;;  %v240_v21 = vpop.f32.mrb[0].mxu1 }
  0xde   :  { %v142_v22 = vadd.f32 %v141_v20, %v66_v17  ;;  %v241_v23 = vadd.f32 %v240_v21, %v66_v17  ;;  %v143_v24 = vpop.f32.mrb[1].mxu0  ;;  %v242_v25 = vpop.f32.mrb[1].mxu1  ;;  %v168_v21 = vld [vmem:[#allocation2] sm:$0xff] }
  0xdf   :  { %v144_v26 = vadd.f32 %v143_v24, %v66_v17  ;;  %v243_v27 = vadd.f32 %v242_v25, %v66_v17  ;;  %v145_v28 = vpop.f32.mrb[2].mxu0  ;;  %v244_v29 = vpop.f32.mrb[2].mxu1  ;;  %v706_v17 = vmov 0.0|0.0  }
  0xe0   :  { %v160_v30 = vmax.f32 %v142_v22, 0.0  ;;  %v259_v31 = vmax.f32 %v241_v23, 0.0  ;;  %v146_v32 = vadd.f32 %v145_v28, %v71_v18  ;;  %v245_v33 = vadd.f32 %v244_v29, %v71_v18  ;;  %v147_v34 = vpop.f32.mrb[3].mxu0  ;;  %v246_v35 = vpop.f32.mrb[3].mxu1  ;;  %649 = vmatprep.subr.bf16.mxu0 %v706_v17  ;;  %655 = vmatprep.subr.bf16.mxu1 %v706_v17  ;;  %v169_v23 = vld [vmem:[#allocation2 + $0x8] sm:$0xff] }
  0xe1   :  { %v161_v36 = vmax.f32 %v144_v26, 0.0  ;;  %v260_v37 = vmax.f32 %v243_v27, 0.0  ;;  %v148_v38 = vadd.f32 %v147_v34, %v71_v18  ;;  %v247_v39 = vadd.f32 %v246_v35, %v71_v18  ;;  %v170_v27 = vld [vmem:[#allocation2 + $0x10] sm:$0xff] }
  0xe2   :  { %v162_v40 = vmax.f32 %v146_v32, 0.0  ;;  %v261_v41 = vmax.f32 %v245_v33, 0.0  ;;  %v650_v18 = vpack.c.bf16 %v333_v15, %v332_v14  ;;  %v171_v32 = vld [vmem:[#allocation2 + $0x18] sm:$0xff] }
  0xe3   :  { %v163_v42 = vmax.f32 %v148_v38, 0.0  ;;  %v262_v43 = vmax.f32 %v247_v39, 0.0  ;;  %v172_v44 = vadd.f32 %v161_v36, %v160_v30  ;;  %v271_v45 = vadd.f32 %v260_v37, %v259_v31 }
  0xe4   :  { %651 = vmatpush3.bf16.msra.mxu0 %v650_v18 }
  0xe5   :  { %v151_v47 = vpop.f32.mrb[4].mxu0  ;;  %v250_v48 = vpop.f32.mrb[4].mxu1  ;;  %173 = vadd.xlane.f32.xlu0 %v172_v44  ;;  %v175_v49 = vadd.f32 %v163_v42, %v162_v40  ;;  %v274_v50 = vadd.f32 %v262_v43, %v261_v41  ;;  %652 = vmatprep.subr.bf16.mxu0 %v706_v17 }
  0xe6   :  { %v152_v51 = vadd.f32 %v151_v47, %v76_v19  ;;  %v251_v52 = vadd.f32 %v250_v48, %v76_v19  ;;  %v153_v53 = vpop.f32.mrb[5].mxu0  ;;  %v252_v54 = vpop.f32.mrb[5].mxu1 }
  0xe7   :  { %v154_v55 = vadd.f32 %v153_v53, %v76_v19  ;;  %v253_v56 = vadd.f32 %v252_v54, %v76_v19  ;;  %v155_v57 = vpop.f32.mrb[6].mxu0  ;;  %v254_v58 = vpop.f32.mrb[6].mxu1  ;;  %176 = vadd.xlane.f32.xlu1 %v175_v49  ;;  %v335_v19 = vld [vmem:[%s867_s3 + $0x18] sm:$0xff]  ;;  %v465_v54 = vld [vmem:[%s871_s7 + $0x10] sm:$0xff] }
  0xe8   :  { %v164_v59 = vmax.f32 %v152_v51, 0.0  ;;  %v263_v60 = vmax.f32 %v251_v52, 0.0  ;;  %v156_v61 = vadd.f32 %v155_v57, %v81_v46  ;;  %v255_v62 = vadd.f32 %v254_v58, %v81_v46  ;;  %v157_v63 = vpop.f32.mrb[7].mxu0  ;;  %v256_v0 = vpop.f32.mrb[7].mxu1  ;;  %v463_v51 = vld [vmem:[%s871_s7] sm:$0xff]  ;;  %v464_v52 = vld [vmem:[%s871_s7 + $0x8] sm:$0xff] }
  0xe9   :  { %v165_v1 = vmax.f32 %v154_v55, 0.0  ;;  %v264_v2 = vmax.f32 %v253_v56, 0.0  ;;  %v158_v3 = vadd.f32 %v157_v63, %v81_v46  ;;  %v257_v4 = vadd.f32 %v256_v0, %v81_v46  ;;  %v466_v55 = vld [vmem:[%s871_s7 + $0x18] sm:$0xff]  ;;  %v609_v57 = vld [vmem:[%s868_s4] ss:$0 sm:$0xff] }
  0xea   :  { %v166_v5 = vmax.f32 %v156_v61, 0.0  ;;  %v265_v6 = vmax.f32 %v255_v62, 0.0  ;;  %v653_v20 = vpack.c.bf16 %v335_v19, %v334_v16  ;;  %v656_v53 = vpack.c.bf16 %v464_v52, %v463_v51  ;;  %v615_v51 = vld [vmem:[%s873_s9] ss:$0 sm:$0xff] }
  0xeb   :  { %v167_v7 = vmax.f32 %v158_v3, 0.0  ;;  %v266_v8 = vmax.f32 %v257_v4, 0.0  ;;  %272 = vadd.xlane.f32.xlu1 %v271_v45  ;;  %v178_v9 = vadd.f32 %v165_v1, %v164_v59  ;;  %v277_v10 = vadd.f32 %v264_v2, %v263_v60 }
  0xec   :  { %654 = vmatpush3.bf16.msra.mxu0 %v653_v20  ;;  %657 = vmatpush3.bf16.msra.mxu1 %v656_v53  ;;  %v659_v56 = vpack.c.bf16 %v466_v55, %v465_v54  ;;  %v616_v54 = vld [vmem:[%s874_s10] ss:$0 sm:$0xff] }
  0xed   :  { %179 = vadd.xlane.f32.xlu0 %v178_v9  ;;  %v181_v12 = vadd.f32 %v167_v7, %v166_v5  ;;  %v280_v13 = vadd.f32 %v266_v8, %v265_v6  ;;  %658 = vmatprep.subr.bf16.mxu1 %v706_v17 }
  0xef   :  { %278 = vadd.xlane.f32.xlu1 %v277_v10 }
  0xf0   :  { %660 = vmatpush3.bf16.msra.mxu1 %v659_v56 }
  0xf1   :  { %182 = vadd.xlane.f32.xlu0 %v181_v12 }
  0xf5   :  { %275 = vadd.xlane.f32.xlu0 %v274_v50 }
  0xf9   :  { %281 = vadd.xlane.f32.xlu0 %v280_v13 }
 0x172   :  { %v174_v22 = vpop.xlane.xlu0 %173 }
 0x173   :  { %v184_v24 = vadd.f32 %v174_v22, %v168_v21  ;;  %v611_v22 = vld [vmem:[%s869_s5] ss:$0 sm:$0xff] }
 0x174   :  { %v177_v25 = vpop.xlane.xlu1 %176 }
 0x175   :  { %189 = vst.msk [vmem:[#allocation2] sm:$0xff] %vm188_vm3, %v184_v24  ;;  %v185_v26 = vadd.f32 %v177_v25, %v169_v23  ;;  %v612_v25 = vld [vmem:[%s870_s6] ss:$0 sm:$0xff] }
 0x177   :  { %190 = vst.msk [vmem:[#allocation2 + $0x8] sm:$0xff] %vm188_vm3, %v185_v26 }
 0x178   :  { %v273_v30 = vpop.xlane.xlu1 %272 }
 0x17a   :  { %v180_v28 = vpop.xlane.xlu0 %179 }
 0x17b   :  { %v186_v29 = vadd.f32 %v180_v28, %v170_v27  ;;  %v613_v28 = vld [vmem:[%s872_s8] ss:$0 sm:$0xff] }
 0x17c   :  { %v267_v31 = vld [vmem:[#allocation2] sm:$0xff]  ;;  %v279_v39 = vpop.xlane.xlu1 %278 }
 0x17d   :  { %v283_v33 = vadd.f32 %v273_v30, %v267_v31  ;;  %191 = vst.msk [vmem:[#allocation2 + $0x10] sm:$0xff] %vm188_vm3, %v186_v29 }
 0x17e   :  { %v183_v34 = vpop.xlane.xlu0 %182  ;;  %v268_v37 = vld [vmem:[#allocation2 + $0x8] sm:$0xff] }
 0x17f   :  { %288 = vst.msk [vmem:[#allocation2] sm:$0xff] %vm287_vm4, %v283_v33  ;;  %v187_v35 = vadd.f32 %v183_v34, %v171_v32 }
 0x181   :  { %192 = vst.msk [vmem:[#allocation2 + $0x18] sm:$0xff] %vm188_vm3, %v187_v35 }
 0x182   :  { %v276_v36 = vpop.xlane.xlu0 %275 }
 0x183   :  { %v284_v38 = vadd.f32 %v276_v36, %v268_v37 }
 0x184   :  { %v269_v40 = vld [vmem:[#allocation2 + $0x10] sm:$0xff] }
 0x185   :  { %v285_v41 = vadd.f32 %v279_v39, %v269_v40  ;;  %289 = vst.msk [vmem:[#allocation2 + $0x8] sm:$0xff] %vm287_vm4, %v284_v38 }
 0x186   :  { %v295_v42 = vld [vmem:[#allocation2] sm:$0xff]  ;;  %v282_v43 = vpop.xlane.xlu0 %281 }
 0x187   :  { %290 = vst.msk [vmem:[#allocation2 + $0x10] sm:$0xff] %vm287_vm4, %v285_v41  ;;  %299 = vxpose.xlu1.b32.start [1/4] (short) (narrow) %v295_v42, 8 }
 0x188   :  { %v270_v44 = vld [vmem:[#allocation2 + $0x18] sm:$0xff] }
 0x189   :  { %v286_v45 = vadd.f32 %v282_v43, %v270_v44 }
 0x18b   :  { %291 = vst.msk [vmem:[#allocation2 + $0x18] sm:$0xff] %vm287_vm4, %v286_v45 }
 0x18c   :  { %v296_v46 = vld [vmem:[#allocation2 + $0x8] sm:$0xff] }
 0x18d   :  { %300 = vxpose.xlu1.b32.cont [2/4] (short) (narrow) %v296_v46, 8 }
 0x18e   :  { %v297_v47 = vld [vmem:[#allocation2 + $0x10] sm:$0xff] }
 0x191   :  { %301 = vxpose.xlu1.b32.cont [3/4] (short) (narrow) %v297_v47, 8 }
 0x192   :  { %v298_v48 = vld [vmem:[#allocation2 + $0x18] sm:$0xff] }
 0x195   :  { %302 = vxpose.xlu1.b32.end [4/4] (short) (narrow) %v298_v48, 8 }
 0x209   :  { %v315_v49 = vpop.trf.xlu1 }
 0x20a   :  { %v331_v50 = vmul.f32 0.00390625, %v315_v49 }
 0x20c   :  { %636 = vmatmul.mubr.msk.f32.vlgmr.msra.gmra.mrb[8].mxu0 %vm343_vm6, %v331_v50 }
 0x2df   :  { %v413_v58 = vpop.f32.mrb[8].mxu0 }
 0x2e0   :  { %v414_v59 = vadd.f32 %v609_v57, %v413_v58  ;;  %v637_v60 = vpop.f32.mrb[9].mxu0 }
 0x2e2   :  { %v417_v61 = vsub.f32 0.0, %v414_v59 }
 0x2e4   :  { %v418_v62 = vmul.f32 1.442695, %v417_v61 }
 0x2e6   :  { %672 = vpow2.f32 %v418_v62 }
 0x2f0   :  { %v673_v63 = vpop.eup %672 }
 0x2f1   :  { %v420_v0 = vadd.f32 1.0, %v673_v63 }
 0x2f3   :  { %674 = vrcp.f32 %v420_v0 }
 0x2fd   :  { %v675_v1 = vpop.eup %674 }
 0x2fe   :  { %v423_v2 = vmul.f32 %v675_v1, %v414_v59 }
 0x300   :  { %v425_v3 = vsel %vm424_vm7, %v423_v2, 0.0 }
 0x301   :  { %v426_v4 = vrot.slane %v425_v3, 4 }
 0x303   :  { %v427_v5 = vadd.f32 %v426_v4, %v425_v3 }
 0x305   :  { %v428_v6 = vrot.slane %v427_v5, 2 }
 0x307   :  { %v429_v7 = vadd.f32 %v428_v6, %v427_v5 }
 0x309   :  { %v430_v8 = vrot.slane %v429_v7, 1 }
 0x30b   :  { %v431_v9 = vadd.f32 %v430_v8, %v429_v7 }
 0x30d   :  { %v433_v10 = vmul.f32 0.5, %v431_v9 }
 0x30f   :  { %v434_v11 = vsub.f32 %v423_v2, %v433_v10 }
 0x311   :  { %v435_v12 = vmul.f32 %v434_v11, %v434_v11  ;;  %v451_v23 = vmul.f32 %v611_v22, %v434_v11 }
 0x313   :  { %v436_v13 = vsel %vm424_vm7, %v435_v12, 0.0 }
 0x314   :  { %v437_v14 = vrot.slane %v436_v13, 4 }
 0x316   :  { %v438_v15 = vadd.f32 %v437_v14, %v436_v13 }
 0x318   :  { %v439_v16 = vrot.slane %v438_v15, 2 }
 0x31a   :  { %v440_v17 = vadd.f32 %v439_v16, %v438_v15 }
 0x31c   :  { %v441_v18 = vrot.slane %v440_v17, 1 }
 0x31e   :  { %v442_v19 = vadd.f32 %v441_v18, %v440_v17 }
 0x320   :  { %v443_v20 = vmul.f32 0.5, %v442_v19 }
 0x322   :  { %v452_v21 = vadd.f32 1e-05, %v443_v20 }
 0x324   :  { %676 = vrsqrt.f32 %v452_v21 }
 0x32e   :  { %v677_v24 = vpop.eup %676 }
 0x32f   :  { %v454_v26 = vmul.f32 %v677_v24, %v451_v23 }
 0x331   :  { %v462_v27 = vadd.f32 %v612_v25, %v454_v26 }
 0x333   :  { %647 = vmatmul.mubr.msk.f32.vlgmr.msra.gmra.mrb[8].mxu1 %vm343_vm6, %v462_v27 }
 0x406   :  { %v543_v29 = vpop.f32.mrb[8].mxu1 }
 0x407   :  { %v544_v30 = vadd.f32 %v613_v28, %v543_v29  ;;  %v648_v31 = vpop.f32.mrb[9].mxu1 }
 0x409   :  { %v548_v32 = vsel %vm547_vm8, %v544_v30, 0.0 }
 0x40a   :  { %v549_v33 = vrot.slane %v548_v32, 4 }
 0x40c   :  { %v550_v34 = vadd.f32 %v549_v33, %v548_v32 }
 0x40e   :  { %v551_v35 = vrot.slane %v550_v34, 2 }
 0x410   :  { %v552_v36 = vadd.f32 %v551_v35, %v550_v34 }
 0x412   :  { %v553_v37 = vrot.slane %v552_v36, 1 }
 0x414   :  { %v554_v38 = vadd.f32 %v553_v37, %v552_v36 }
 0x416   :  { %v555_v39 = vmul.f32 0.5, %v554_v38 }
 0x418   :  { %v556_v40 = vsub.f32 %v544_v30, %v555_v39 }
 0x41a   :  { %v557_v41 = vmul.f32 %v556_v40, %v556_v40  ;;  %v573_v52 = vmul.f32 %v615_v51, %v556_v40 }
 0x41c   :  { %v558_v42 = vsel %vm547_vm8, %v557_v41, 0.0 }
 0x41d   :  { %v559_v43 = vrot.slane %v558_v42, 4 }
 0x41f   :  { %v560_v44 = vadd.f32 %v559_v43, %v558_v42 }
 0x421   :  { %v561_v45 = vrot.slane %v560_v44, 2 }
 0x423   :  { %v562_v46 = vadd.f32 %v561_v45, %v560_v44 }
 0x425   :  { %v563_v47 = vrot.slane %v562_v46, 1 }
 0x427   :  { %v564_v48 = vadd.f32 %v563_v47, %v562_v46 }
 0x429   :  { %v565_v49 = vmul.f32 0.5, %v564_v48 }
 0x42b   :  { %v574_v50 = vadd.f32 1e-05, %v565_v49 }
 0x42d   :  { %678 = vrsqrt.f32 %v574_v50 }
 0x437   :  { %v679_v53 = vpop.eup %678 }
 0x438   :  { %v576_v55 = vmul.f32 %v679_v53, %v573_v52 }
 0x43a   :  { %v584_v56 = vadd.f32 %v616_v54, %v576_v55 }
 0x43c   :  { %585 = vst.msk [vmem:[#allocation3] sm:$0x3] %vm547_vm8, %v584_v56 }
 0x43d   :  { %691 = shalt.err (!%p688_p4)
}
 0x43e   :  { %s692_s15 = scalar_lea.hbm %s875_s11, 32 }
 0x43f   :  { %p693_p5 = scmp.ne.s32.totalorder %s875_s11, %s692_s15  ;;  %p696_p6 = scmp.lt.u32.totalorder %s692_s15, %s875_s11 }
 0x441   :  { %p698_p7 = pnand %p696_p6, %p693_p5 }
 0x443   :  { %701 = shalt.err (!%p698_p7)
}
 0x444   :  { %595 = dma.vmem_to_hbm [thread:$0]  %s593_s2, 32, %s875_s11, [#allocation4]  }
 0x445   :  { %702 = dma.done.wait [#allocation4], 32  }
 0x446   :  { %703 = vsyncadd [#allocation4], 4294967264 }
 0x447   :  { %599 = vsyncpa [#allocation4], 1 }

</bundles_post_ra>
